<compile_context>
chip_gen: v5e
topology: v5e:2x2
jax: 0.10.0
libtpu: 0.0.40
codegen_flags: <defaults>
</compile_context>

<pallas_src>
import functools
import math

import jax
import jax.numpy as jnp
from jax import lax
from jax.experimental import pallas as pl
from jax.experimental.pallas import tpu as pltpu


def _layer_norm(y, gamma, beta, eps):
    mu = jnp.mean(y, axis=-1, keepdims=True)
    var = jnp.mean((y - mu) ** 2, axis=-1, keepdims=True)
    return (y - mu) * lax.rsqrt(var + eps) * gamma + beta


def _erf(x):
    # Abramowitz & Stegun 7.1.26 (max abs error 1.5e-7); only exp (EUP) + VPU ops,
    # so it lowers unconditionally in Mosaic.
    a1, a2, a3, a4, a5 = (0.254829592, -0.284496736, 1.421413741,
                          -1.453152027, 1.061405429)
    p = 0.3275911
    ax = jnp.abs(x)
    t = 1.0 / (1.0 + p * ax)
    poly = ((((a5 * t + a4) * t + a3) * t + a2) * t + a1) * t
    y = 1.0 - poly * jnp.exp(-ax * ax)
    return jnp.where(x < 0.0, -y, y)


def _tsa_kernel(x_ref,
                wqkv_ref, bqkv_ref,
                wo_ref, bo_ref, g1_ref, be1_ref,
                w1_ref, b1_ref, w2_ref, b2_ref, g2_ref, be2_ref,
                out_ref,
                qkv_s, vheads_s, mixed_s,
                *, n_heads, d_head, eps):
    TB, L, Dm = x_ref.shape
    H, dh = n_heads, d_head
    Dv = H * dh
    M = TB * L

    xf = x_ref[...].reshape(M, Dm).astype(jnp.float32)           # [TB*L, Dm]

    # ---- fused QKV projection: one [TB*L, Dm] x [Dm, 3*H*dh] matmul, staged in VMEM ----
    qkv_s[...] = (jnp.dot(xf, wqkv_ref[...], preferred_element_type=jnp.float32)
                  + bqkv_ref[...]).reshape(TB, L, 3 * Dv)

    scale = 1.0 / math.sqrt(dh)                                   # FullAttention: 1/sqrt(E)

    # ---- per-head attention, batched over TB (one batch dim per dot_general).
    # H is small & static so the loop unrolls; intermediates stay bounded via scratch.
    for h in range(H):
        qh = qkv_s[:, :, h * dh:(h + 1) * dh]                     # [TB, L, dh]
        kh = qkv_s[:, :, Dv + h * dh:Dv + (h + 1) * dh]
        vh = qkv_s[:, :, 2 * Dv + h * dh:2 * Dv + (h + 1) * dh]
        s = jnp.einsum("bld,bsd->bls", qh, kh,
                       preferred_element_type=jnp.float32) * scale
        s = s - jnp.max(s, axis=-1, keepdims=True)
        p = jnp.exp(s)
        a = p * pl.reciprocal(jnp.sum(p, axis=-1, keepdims=True), approx=True)
        vo = jnp.einsum("bls,bsd->bld", a, vh,
                        preferred_element_type=jnp.float32)       # [TB, L, dh]
        # head-major staging: row order (h, l) per batch == torch out.transpose(2,1)
        vheads_s[:, h * L:(h + 1) * L, :] = vo

    # ---- the `mix=True` .view(B, L, H*dh): mixed[b, r, j*dh:(j+1)*dh] = vheads[b, r*H+j]
    # contiguous writes above, stride-H sublane reads here -> lane-dense mixed slab.
    for j in range(H):
        mixed_s[:, :, j * dh:(j + 1) * dh] = vheads_s[:, pl.ds(j, L, stride=H), :]
    mixed = mixed_s[...].reshape(M, Dv)                           # [TB*L, H*dh]

    # ---- out-projection + residual + LayerNorm1 ----
    attn = jnp.dot(mixed, wo_ref[...], preferred_element_type=jnp.float32) + bo_ref[...]
    y = _layer_norm(xf + attn, g1_ref[...], be1_ref[...], eps)    # dropout == identity

    # ---- MLP (Linear -> exact-erf GELU -> Linear) + residual + LayerNorm2 ----
    hdn = jnp.dot(y, w1_ref[...], preferred_element_type=jnp.float32) + b1_ref[...]
    hdn = 0.5 * hdn * (1.0 + _erf(hdn * (1.0 / math.sqrt(2.0))))
    mlp = jnp.dot(hdn, w2_ref[...], preferred_element_type=jnp.float32) + b2_ref[...]
    z = _layer_norm(y + mlp, g2_ref[...], be2_ref[...], eps)

    out_ref[...] = z.reshape(TB, L, Dm).astype(out_ref.dtype)


def _pick_tb(B, L, row_target=256):
    """Largest divisor of B whose row tile TB*L fits row_target; if the tile is already
    >=128 rows, prefer keeping >=2 grid steps (dual-TensorCore v7x)."""
    divisors = [d for d in range(1, B + 1) if B % d == 0]
    fits = [d for d in divisors if d * L <= max(row_target, L)]
    tb = max(fits) if fits else 1
    if B // tb < 2:
        alt = [d for d in fits if B // d >= 2 and d * L >= 128]
        if alt:
            tb = max(alt)
    return tb


def two_stage_attention(x, params, n_heads, *, eps=1e-5, row_target=256):
    B, L, Dm = x.shape
    H = n_heads
    dh = Dm // H
    Dv = H * dh
    d_ff = params["w1"].shape[1]

    TB = _pick_tb(B, L, row_target)
    grid = (B // TB,)

    # host-side parameter packing (one-time, outside the kernel)
    wqkv = jnp.concatenate([params["wq"], params["wk"], params["wv"]], axis=1)   # [Dm, 3Dv]
    bqkv = jnp.concatenate([params["bq"], params["bk"], params["bv"]]).reshape(1, -1)
    bo = params["bo"].reshape(1, -1)
    g1, be1 = params["g1"].reshape(1, -1), params["be1"].reshape(1, -1)
    b1 = params["b1"].reshape(1, -1)
    b2 = params["b2"].reshape(1, -1)
    g2, be2 = params["g2"].reshape(1, -1), params["be2"].reshape(1, -1)

    def full2(a):                 # full-array spec for a 2-D parameter (stays resident)
        return pl.BlockSpec(a.shape, lambda g: (0, 0))

    # rough VMEM budget (block double-buffers + weights + scratch), never below default
    weight_elems = (wqkv.size + bqkv.size + params["wo"].size + bo.size
                    + g1.size + be1.size + params["w1"].size + b1.size
                    + params["w2"].size + b2.size + g2.size + be2.size)
    block_elems = TB * L * Dm
    scratch_elems = TB * L * 3 * Dv + TB * H * L * dh + TB * L * Dv
    vmem_est = 4 * (4 * block_elems + 2 * int(weight_elems) + scratch_elems
                    + 2 * TB * L * d_ff)
    vmem_limit = int(min(100 * 2 ** 20, max(32 * 2 ** 20, 2 * vmem_est)))

    kernel = functools.partial(_tsa_kernel, n_heads=H, d_head=dh, eps=eps)

    return pl.pallas_call(
        kernel,
        out_shape=jax.ShapeDtypeStruct((B, L, Dm), x.dtype),
        grid=grid,
        in_specs=[
            pl.BlockSpec((TB, L, Dm), lambda g: (g, 0, 0)),
            full2(wqkv), full2(bqkv),
            full2(params["wo"]), full2(bo),
            full2(g1), full2(be1),
            full2(params["w1"]), full2(b1),
            full2(params["w2"]), full2(b2),
            full2(g2), full2(be2),
        ],
        out_specs=pl.BlockSpec((TB, L, Dm), lambda g: (g, 0, 0)),
        scratch_shapes=[
            pltpu.VMEM((TB, L, 3 * Dv), jnp.float32),     # fused q|k|v slab
            pltpu.VMEM((TB, H * L, dh), jnp.float32),     # per-head attn out (b,h,l,d order)
            pltpu.VMEM((TB, L, Dv), jnp.float32),         # lane-dense "mixed" slab
        ],
        compiler_params=pltpu.CompilerParams(
            dimension_semantics=("parallel",),
            vmem_limit_bytes=vmem_limit),
    )(x,
      wqkv, bqkv,
      params["wo"], bo,
      g1, be1,
      params["w1"], b1,
      params["w2"], b2,
      g2, be2)


# ------------------------------- pure-JAX reference ----------------------------------
def reference(x, p, n_heads):
    B, L, Dm = x.shape
    H = n_heads
    dh = Dm // H
    hp = lax.Precision.HIGHEST

    q = (x @ p["wq"] + p["bq"]).reshape(B, L, H, dh)
    k = (x @ p["wk"] + p["bk"]).reshape(B, L, H, dh)
    v = (x @ p["wv"] + p["bv"]).reshape(B, L, H, dh)
    scale = 1.0 / math.sqrt(dh)
    scores = jnp.einsum("blhe,bshe->bhls", q, k, precision=hp)
    a = jax.nn.softmax(scale * scores, axis=-1)
    vv = jnp.einsum("bhls,bshd->blhd", a, v, precision=hp)
    out = jnp.transpose(vv, (0, 2, 1, 3)).reshape(B, L, H * dh)   # mix=True quirk
    attn = out @ p["wo"] + p["bo"]

    def ln(y, g, b):
        mu = jnp.mean(y, axis=-1, keepdims=True)
        var = jnp.mean((y - mu) ** 2, axis=-1, keepdims=True)
        return (y - mu) * lax.rsqrt(var + 1e-5) * g + b

    y = ln(x + attn, p["g1"], p["be1"])
    h = y @ p["w1"] + p["b1"]
    h = 0.5 * h * (1.0 + lax.erf(h / jnp.sqrt(2.0)))
    m = h @ p["w2"] + p["b2"]
    return ln(y + m, p["g2"], p["be2"])


if __name__ == "__main__":
    B, L, Dm, H = 2, 8, 32, 4          # batch, seg_num, d_model, n_heads
    d_ff = 4 * Dm

    key = jax.random.PRNGKey(0)
    ks = jax.random.split(key, 16)

    def w(k, shape, s=0.05):
        return s * jax.random.normal(k, shape, jnp.float32)

    params = {
        "wq": w(ks[0], (Dm, Dm)), "bq": w(ks[1], (Dm,)),
        "wk": w(ks[2], (Dm, Dm)), "bk": w(ks[3], (Dm,)),
        "wv": w(ks[4], (Dm, Dm)), "bv": w(ks[5], (Dm,)),
        "wo": w(ks[6], (Dm, Dm)), "bo": w(ks[7], (Dm,)),
        "g1": jnp.ones((Dm,), jnp.float32), "be1": jnp.zeros((Dm,), jnp.float32),
        "w1": w(ks[8], (Dm, d_ff)), "b1": w(ks[9], (d_ff,)),
        "w2": w(ks[10], (d_ff, Dm)), "b2": w(ks[11], (Dm,)),
        "g2": jnp.ones((Dm,), jnp.float32), "be2": jnp.zeros((Dm,), jnp.float32),
    }

    x = jax.random.normal(ks[12], (B, L, Dm), jnp.float32)

    out = two_stage_attention(x, params, H)
    out = jax.block_until_ready(out)

    ref = jax.block_until_ready(reference(x, params, H))
    assert out.shape == (B, L, Dm)
    assert jnp.allclose(out, ref, atol=5e-3, rtol=5e-3), (
        f"max abs diff {jnp.max(jnp.abs(out - ref))}")

    print("KERNEL_OK")
</pallas_src>

<mosaic_0001>
module attributes {stable_mosaic.version = 11 : i64} {
  func.func @_tsa_kernel(%arg0: i32, %arg1: memref<2x8x32xf32, #tpu.memory_space<vmem>>, %arg2: memref<32x96xf32, #tpu.memory_space<vmem>>, %arg3: memref<1x96xf32, #tpu.memory_space<vmem>>, %arg4: memref<32x32xf32, #tpu.memory_space<vmem>>, %arg5: memref<1x32xf32, #tpu.memory_space<vmem>>, %arg6: memref<1x32xf32, #tpu.memory_space<vmem>>, %arg7: memref<1x32xf32, #tpu.memory_space<vmem>>, %arg8: memref<32x128xf32, #tpu.memory_space<vmem>>, %arg9: memref<1x128xf32, #tpu.memory_space<vmem>>, %arg10: memref<128x32xf32, #tpu.memory_space<vmem>>, %arg11: memref<1x32xf32, #tpu.memory_space<vmem>>, %arg12: memref<1x32xf32, #tpu.memory_space<vmem>>, %arg13: memref<1x32xf32, #tpu.memory_space<vmem>>, %arg14: memref<2x8x32xf32, #tpu.memory_space<vmem>>, %arg15: memref<2x8x96xf32, #tpu.memory_space<vmem>>, %arg16: memref<2x32x8xf32, #tpu.memory_space<vmem>>, %arg17: memref<2x8x32xf32, #tpu.memory_space<vmem>>) attributes {dimension_semantics = [#tpu.dimension_semantics<parallel>], iteration_bounds = array<i64: 1>, scalar_prefetch = 0 : i64, scratch_operands = 3 : i64, tpu.core_type = #tpu.core_type<tc>, window_params = [{transform_indices = @transform_0, window_bounds = array<i64: 2, 8, 32>}, {pipeline_mode = #tpu.pipeline_mode<synchronous>, transform_indices = @transform_1, window_bounds = array<i64: 32, 96>}, {pipeline_mode = #tpu.pipeline_mode<synchronous>, transform_indices = @transform_2, window_bounds = array<i64: 1, 96>}, {pipeline_mode = #tpu.pipeline_mode<synchronous>, transform_indices = @transform_3, window_bounds = array<i64: 32, 32>}, {pipeline_mode = #tpu.pipeline_mode<synchronous>, transform_indices = @transform_4, window_bounds = array<i64: 1, 32>}, {pipeline_mode = #tpu.pipeline_mode<synchronous>, transform_indices = @transform_5, window_bounds = array<i64: 1, 32>}, {pipeline_mode = #tpu.pipeline_mode<synchronous>, transform_indices = @transform_6, window_bounds = array<i64: 1, 32>}, {pipeline_mode = #tpu.pipeline_mode<synchronous>, transform_indices = @transform_7, window_bounds = array<i64: 32, 128>}, {pipeline_mode = #tpu.pipeline_mode<synchronous>, transform_indices = @transform_8, window_bounds = array<i64: 1, 128>}, {pipeline_mode = #tpu.pipeline_mode<synchronous>, transform_indices = @transform_9, window_bounds = array<i64: 128, 32>}, {pipeline_mode = #tpu.pipeline_mode<synchronous>, transform_indices = @transform_10, window_bounds = array<i64: 1, 32>}, {pipeline_mode = #tpu.pipeline_mode<synchronous>, transform_indices = @transform_11, window_bounds = array<i64: 1, 32>}, {pipeline_mode = #tpu.pipeline_mode<synchronous>, transform_indices = @transform_12, window_bounds = array<i64: 1, 32>}, {transform_indices = @transform_13, window_bounds = array<i64: 2, 8, 32>}]} {
    %c0 = arith.constant 0 : index
    %c0_0 = arith.constant 0 : index
    %c0_1 = arith.constant 0 : index
    %0 = vector.load %arg1[%c0, %c0_0, %c0_1] : memref<2x8x32xf32, #tpu.memory_space<vmem>>, vector<2x8x32xf32>
    %1 = vector.shape_cast %0 : vector<2x8x32xf32> to vector<16x32xf32>
    %c0_2 = arith.constant 0 : index
    %c0_3 = arith.constant 0 : index
    %2 = vector.load %arg2[%c0_2, %c0_3] : memref<32x96xf32, #tpu.memory_space<vmem>>, vector<32x96xf32>
    %cst = arith.constant dense<0.000000e+00> : vector<16x96xf32>
    %3 = tpu.matmul %1, %2, %cst {dimension_numbers = #tpu.dot_dimension_numbers<[1], [0], [0], [1], [0, 0, 1, 1], [], []>} : vector<16x32xf32>, vector<32x96xf32>, vector<16x96xf32> -> vector<16x96xf32>
    %c0_4 = arith.constant 0 : index
    %c0_5 = arith.constant 0 : index
    %4 = vector.load %arg3[%c0_4, %c0_5] : memref<1x96xf32, #tpu.memory_space<vmem>>, vector<1x96xf32>
    %5 = vector.broadcast %4 : vector<1x96xf32> to vector<16x96xf32>
    %6 = arith.addf %3, %5 : vector<16x96xf32>
    %7 = vector.shape_cast %6 : vector<16x96xf32> to vector<2x8x96xf32>
    %c0_6 = arith.constant 0 : index
    %c0_7 = arith.constant 0 : index
    %c0_8 = arith.constant 0 : index
    %8 = vector.load %arg15[%c0_6, %c0_7, %c0_8] : memref<2x8x96xf32, #tpu.memory_space<vmem>>, vector<2x8x96xf32>
    tpu.vector_store %arg15[%c0_6, %c0_7, %c0_8], %7 {strides = array<i32>} : memref<2x8x96xf32, #tpu.memory_space<vmem>>, vector<2x8x96xf32>,
    %c0_9 = arith.constant 0 : index
    %c0_10 = arith.constant 0 : index
    %c0_11 = arith.constant 0 : index
    %9 = vector.load %arg15[%c0_9, %c0_10, %c0_11] : memref<2x8x96xf32, #tpu.memory_space<vmem>>, vector<2x8x8xf32>
    %c0_12 = arith.constant 0 : index
    %c0_13 = arith.constant 0 : index
    %c32 = arith.constant 32 : index
    %10 = vector.load %arg15[%c0_12, %c0_13, %c32] : memref<2x8x96xf32, #tpu.memory_space<vmem>>, vector<2x8x8xf32>
    %c0_14 = arith.constant 0 : index
    %c0_15 = arith.constant 0 : index
    %c64 = arith.constant 64 : index
    %11 = vector.load %arg15[%c0_14, %c0_15, %c64] : memref<2x8x96xf32, #tpu.memory_space<vmem>>, vector<2x8x8xf32>
    "tpu.trace_start"() <{level = 10 : i32, message = "bld,bsd->bls"}> : () -> ()
    %cst_16 = arith.constant dense<0.000000e+00> : vector<2x8x8xf32>
    %12 = tpu.matmul %9, %10, %cst_16 {dimension_numbers = #tpu.dot_dimension_numbers<[2], [2], [1], [1], [0, 0, 0, 1, 1, 1], [0], [0]>} : vector<2x8x8xf32>, vector<2x8x8xf32>, vector<2x8x8xf32> -> vector<2x8x8xf32>
    "tpu.trace_stop"() : () -> ()
    %cst_17 = arith.constant 0.353553385 : f32
    %13 = vector.broadcast %cst_17 : f32 to vector<2x8x8xf32>
    %14 = arith.mulf %12, %13 : vector<2x8x8xf32>
    %cst_18 = arith.constant dense<0xFF800000> : vector<2x8xf32>
    %15 = vector.multi_reduction <maximumf>, %14, %cst_18 [2] : vector<2x8x8xf32> to vector<2x8xf32>
    %16 = vector.shape_cast %15 : vector<2x8xf32> to vector<2x8x1xf32>
    %17 = vector.broadcast %16 : vector<2x8x1xf32> to vector<2x8x8xf32>
    %18 = arith.subf %14, %17 : vector<2x8x8xf32>
    %19 = math.exp %18 : vector<2x8x8xf32>
    %cst_19 = arith.constant dense<0.000000e+00> : vector<2x8xf32>
    %20 = vector.multi_reduction <add>, %19, %cst_19 [2] : vector<2x8x8xf32> to vector<2x8xf32>
    %21 = vector.shape_cast %20 : vector<2x8xf32> to vector<2x8x1xf32>
    %22 = tpu.reciprocal %21 {approx = true} : vector<2x8x1xf32> -> vector<2x8x1xf32>
    %23 = vector.broadcast %22 : vector<2x8x1xf32> to vector<2x8x8xf32>
    %24 = arith.mulf %19, %23 : vector<2x8x8xf32>
    "tpu.trace_start"() <{level = 10 : i32, message = "bls,bsd->bld"}> : () -> ()
    %cst_20 = arith.constant dense<0.000000e+00> : vector<2x8x8xf32>
    %25 = tpu.matmul %24, %11, %cst_20 {dimension_numbers = #tpu.dot_dimension_numbers<[2], [1], [1], [2], [0, 0, 0, 1, 1, 2], [0], [0]>} : vector<2x8x8xf32>, vector<2x8x8xf32>, vector<2x8x8xf32> -> vector<2x8x8xf32>
    "tpu.trace_stop"() : () -> ()
    %c0_21 = arith.constant 0 : index
    %c0_22 = arith.constant 0 : index
    %c0_23 = arith.constant 0 : index
    %26 = vector.load %arg16[%c0_21, %c0_22, %c0_23] : memref<2x32x8xf32, #tpu.memory_space<vmem>>, vector<2x8x8xf32>
    tpu.vector_store %arg16[%c0_21, %c0_22, %c0_23], %25 {strides = array<i32>} : memref<2x32x8xf32, #tpu.memory_space<vmem>>, vector<2x8x8xf32>,
    %c0_24 = arith.constant 0 : index
    %c0_25 = arith.constant 0 : index
    %c8 = arith.constant 8 : index
    %27 = vector.load %arg15[%c0_24, %c0_25, %c8] : memref<2x8x96xf32, #tpu.memory_space<vmem>>, vector<2x8x8xf32>
    %c0_26 = arith.constant 0 : index
    %c0_27 = arith.constant 0 : index
    %c40 = arith.constant 40 : index
    %28 = vector.load %arg15[%c0_26, %c0_27, %c40] : memref<2x8x96xf32, #tpu.memory_space<vmem>>, vector<2x8x8xf32>
    %c0_28 = arith.constant 0 : index
    %c0_29 = arith.constant 0 : index
    %c72 = arith.constant 72 : index
    %29 = vector.load %arg15[%c0_28, %c0_29, %c72] : memref<2x8x96xf32, #tpu.memory_space<vmem>>, vector<2x8x8xf32>
    "tpu.trace_start"() <{level = 10 : i32, message = "bld,bsd->bls"}> : () -> ()
    %cst_30 = arith.constant dense<0.000000e+00> : vector<2x8x8xf32>
    %30 = tpu.matmul %27, %28, %cst_30 {dimension_numbers = #tpu.dot_dimension_numbers<[2], [2], [1], [1], [0, 0, 0, 1, 1, 1], [0], [0]>} : vector<2x8x8xf32>, vector<2x8x8xf32>, vector<2x8x8xf32> -> vector<2x8x8xf32>
    "tpu.trace_stop"() : () -> ()
    %cst_31 = arith.constant 0.353553385 : f32
    %31 = vector.broadcast %cst_31 : f32 to vector<2x8x8xf32>
    %32 = arith.mulf %30, %31 : vector<2x8x8xf32>
    %cst_32 = arith.constant dense<0xFF800000> : vector<2x8xf32>
    %33 = vector.multi_reduction <maximumf>, %32, %cst_32 [2] : vector<2x8x8xf32> to vector<2x8xf32>
    %34 = vector.shape_cast %33 : vector<2x8xf32> to vector<2x8x1xf32>
    %35 = vector.broadcast %34 : vector<2x8x1xf32> to vector<2x8x8xf32>
    %36 = arith.subf %32, %35 : vector<2x8x8xf32>
    %37 = math.exp %36 : vector<2x8x8xf32>
    %cst_33 = arith.constant dense<0.000000e+00> : vector<2x8xf32>
    %38 = vector.multi_reduction <add>, %37, %cst_33 [2] : vector<2x8x8xf32> to vector<2x8xf32>
    %39 = vector.shape_cast %38 : vector<2x8xf32> to vector<2x8x1xf32>
    %40 = tpu.reciprocal %39 {approx = true} : vector<2x8x1xf32> -> vector<2x8x1xf32>
    %41 = vector.broadcast %40 : vector<2x8x1xf32> to vector<2x8x8xf32>
    %42 = arith.mulf %37, %41 : vector<2x8x8xf32>
    "tpu.trace_start"() <{level = 10 : i32, message = "bls,bsd->bld"}> : () -> ()
    %cst_34 = arith.constant dense<0.000000e+00> : vector<2x8x8xf32>
    %43 = tpu.matmul %42, %29, %cst_34 {dimension_numbers = #tpu.dot_dimension_numbers<[2], [1], [1], [2], [0, 0, 0, 1, 1, 2], [0], [0]>} : vector<2x8x8xf32>, vector<2x8x8xf32>, vector<2x8x8xf32> -> vector<2x8x8xf32>
    "tpu.trace_stop"() : () -> ()
    %c0_35 = arith.constant 0 : index
    %c8_36 = arith.constant 8 : index
    %c0_37 = arith.constant 0 : index
    %44 = vector.load %arg16[%c0_35, %c8_36, %c0_37] : memref<2x32x8xf32, #tpu.memory_space<vmem>>, vector<2x8x8xf32>
    tpu.vector_store %arg16[%c0_35, %c8_36, %c0_37], %43 {strides = array<i32>} : memref<2x32x8xf32, #tpu.memory_space<vmem>>, vector<2x8x8xf32>,
    %c0_38 = arith.constant 0 : index
    %c0_39 = arith.constant 0 : index
    %c16 = arith.constant 16 : index
    %45 = vector.load %arg15[%c0_38, %c0_39, %c16] : memref<2x8x96xf32, #tpu.memory_space<vmem>>, vector<2x8x8xf32>
    %c0_40 = arith.constant 0 : index
    %c0_41 = arith.constant 0 : index
    %c48 = arith.constant 48 : index
    %46 = vector.load %arg15[%c0_40, %c0_41, %c48] : memref<2x8x96xf32, #tpu.memory_space<vmem>>, vector<2x8x8xf32>
    %c0_42 = arith.constant 0 : index
    %c0_43 = arith.constant 0 : index
    %c80 = arith.constant 80 : index
    %47 = vector.load %arg15[%c0_42, %c0_43, %c80] : memref<2x8x96xf32, #tpu.memory_space<vmem>>, vector<2x8x8xf32>
    "tpu.trace_start"() <{level = 10 : i32, message = "bld,bsd->bls"}> : () -> ()
    %cst_44 = arith.constant dense<0.000000e+00> : vector<2x8x8xf32>
    %48 = tpu.matmul %45, %46, %cst_44 {dimension_numbers = #tpu.dot_dimension_numbers<[2], [2], [1], [1], [0, 0, 0, 1, 1, 1], [0], [0]>} : vector<2x8x8xf32>, vector<2x8x8xf32>, vector<2x8x8xf32> -> vector<2x8x8xf32>
    "tpu.trace_stop"() : () -> ()
    %cst_45 = arith.constant 0.353553385 : f32
    %49 = vector.broadcast %cst_45 : f32 to vector<2x8x8xf32>
    %50 = arith.mulf %48, %49 : vector<2x8x8xf32>
    %cst_46 = arith.constant dense<0xFF800000> : vector<2x8xf32>
    %51 = vector.multi_reduction <maximumf>, %50, %cst_46 [2] : vector<2x8x8xf32> to vector<2x8xf32>
    %52 = vector.shape_cast %51 : vector<2x8xf32> to vector<2x8x1xf32>
    %53 = vector.broadcast %52 : vector<2x8x1xf32> to vector<2x8x8xf32>
    %54 = arith.subf %50, %53 : vector<2x8x8xf32>
    %55 = math.exp %54 : vector<2x8x8xf32>
    %cst_47 = arith.constant dense<0.000000e+00> : vector<2x8xf32>
    %56 = vector.multi_reduction <add>, %55, %cst_47 [2] : vector<2x8x8xf32> to vector<2x8xf32>
    %57 = vector.shape_cast %56 : vector<2x8xf32> to vector<2x8x1xf32>
    %58 = tpu.reciprocal %57 {approx = true} : vector<2x8x1xf32> -> vector<2x8x1xf32>
    %59 = vector.broadcast %58 : vector<2x8x1xf32> to vector<2x8x8xf32>
    %60 = arith.mulf %55, %59 : vector<2x8x8xf32>
    "tpu.trace_start"() <{level = 10 : i32, message = "bls,bsd->bld"}> : () -> ()
    %cst_48 = arith.constant dense<0.000000e+00> : vector<2x8x8xf32>
    %61 = tpu.matmul %60, %47, %cst_48 {dimension_numbers = #tpu.dot_dimension_numbers<[2], [1], [1], [2], [0, 0, 0, 1, 1, 2], [0], [0]>} : vector<2x8x8xf32>, vector<2x8x8xf32>, vector<2x8x8xf32> -> vector<2x8x8xf32>
    "tpu.trace_stop"() : () -> ()
    %c0_49 = arith.constant 0 : index
    %c16_50 = arith.constant 16 : index
    %c0_51 = arith.constant 0 : index
    %62 = vector.load %arg16[%c0_49, %c16_50, %c0_51] : memref<2x32x8xf32, #tpu.memory_space<vmem>>, vector<2x8x8xf32>
    tpu.vector_store %arg16[%c0_49, %c16_50, %c0_51], %61 {strides = array<i32>} : memref<2x32x8xf32, #tpu.memory_space<vmem>>, vector<2x8x8xf32>,
    %c0_52 = arith.constant 0 : index
    %c0_53 = arith.constant 0 : index
    %c24 = arith.constant 24 : index
    %63 = vector.load %arg15[%c0_52, %c0_53, %c24] : memref<2x8x96xf32, #tpu.memory_space<vmem>>, vector<2x8x8xf32>
    %c0_54 = arith.constant 0 : index
    %c0_55 = arith.constant 0 : index
    %c56 = arith.constant 56 : index
    %64 = vector.load %arg15[%c0_54, %c0_55, %c56] : memref<2x8x96xf32, #tpu.memory_space<vmem>>, vector<2x8x8xf32>
    %c0_56 = arith.constant 0 : index
    %c0_57 = arith.constant 0 : index
    %c88 = arith.constant 88 : index
    %65 = vector.load %arg15[%c0_56, %c0_57, %c88] : memref<2x8x96xf32, #tpu.memory_space<vmem>>, vector<2x8x8xf32>
    "tpu.trace_start"() <{level = 10 : i32, message = "bld,bsd->bls"}> : () -> ()
    %cst_58 = arith.constant dense<0.000000e+00> : vector<2x8x8xf32>
    %66 = tpu.matmul %63, %64, %cst_58 {dimension_numbers = #tpu.dot_dimension_numbers<[2], [2], [1], [1], [0, 0, 0, 1, 1, 1], [0], [0]>} : vector<2x8x8xf32>, vector<2x8x8xf32>, vector<2x8x8xf32> -> vector<2x8x8xf32>
    "tpu.trace_stop"() : () -> ()
    %cst_59 = arith.constant 0.353553385 : f32
    %67 = vector.broadcast %cst_59 : f32 to vector<2x8x8xf32>
    %68 = arith.mulf %66, %67 : vector<2x8x8xf32>
    %cst_60 = arith.constant dense<0xFF800000> : vector<2x8xf32>
    %69 = vector.multi_reduction <maximumf>, %68, %cst_60 [2] : vector<2x8x8xf32> to vector<2x8xf32>
    %70 = vector.shape_cast %69 : vector<2x8xf32> to vector<2x8x1xf32>
    %71 = vector.broadcast %70 : vector<2x8x1xf32> to vector<2x8x8xf32>
    %72 = arith.subf %68, %71 : vector<2x8x8xf32>
    %73 = math.exp %72 : vector<2x8x8xf32>
    %cst_61 = arith.constant dense<0.000000e+00> : vector<2x8xf32>
    %74 = vector.multi_reduction <add>, %73, %cst_61 [2] : vector<2x8x8xf32> to vector<2x8xf32>
    %75 = vector.shape_cast %74 : vector<2x8xf32> to vector<2x8x1xf32>
    %76 = tpu.reciprocal %75 {approx = true} : vector<2x8x1xf32> -> vector<2x8x1xf32>
    %77 = vector.broadcast %76 : vector<2x8x1xf32> to vector<2x8x8xf32>
    %78 = arith.mulf %73, %77 : vector<2x8x8xf32>
    "tpu.trace_start"() <{level = 10 : i32, message = "bls,bsd->bld"}> : () -> ()
    %cst_62 = arith.constant dense<0.000000e+00> : vector<2x8x8xf32>
    %79 = tpu.matmul %78, %65, %cst_62 {dimension_numbers = #tpu.dot_dimension_numbers<[2], [1], [1], [2], [0, 0, 0, 1, 1, 2], [0], [0]>} : vector<2x8x8xf32>, vector<2x8x8xf32>, vector<2x8x8xf32> -> vector<2x8x8xf32>
    "tpu.trace_stop"() : () -> ()
    %c0_63 = arith.constant 0 : index
    %c24_64 = arith.constant 24 : index
    %c0_65 = arith.constant 0 : index
    %80 = vector.load %arg16[%c0_63, %c24_64, %c0_65] : memref<2x32x8xf32, #tpu.memory_space<vmem>>, vector<2x8x8xf32>
    tpu.vector_store %arg16[%c0_63, %c24_64, %c0_65], %79 {strides = array<i32>} : memref<2x32x8xf32, #tpu.memory_space<vmem>>, vector<2x8x8xf32>,
    %c0_66 = arith.constant 0 : index
    %c0_67 = arith.constant 0 : index
    %c0_68 = arith.constant 0 : index
    %81 = tpu.strided_load %arg16[%c0_66, %c0_67, %c0_68] {strides = array<i32: 1, 4, 1>} : memref<2x32x8xf32, #tpu.memory_space<vmem>>, vector<2x8x8xf32>
    %c0_69 = arith.constant 0 : index
    %c0_70 = arith.constant 0 : index
    %c0_71 = arith.constant 0 : index
    %82 = vector.load %arg17[%c0_69, %c0_70, %c0_71] : memref<2x8x32xf32, #tpu.memory_space<vmem>>, vector<2x8x8xf32>
    tpu.vector_store %arg17[%c0_69, %c0_70, %c0_71], %81 {strides = array<i32>} : memref<2x8x32xf32, #tpu.memory_space<vmem>>, vector<2x8x8xf32>,
    %c0_72 = arith.constant 0 : index
    %c1 = arith.constant 1 : index
    %c0_73 = arith.constant 0 : index
    %83 = tpu.strided_load %arg16[%c0_72, %c1, %c0_73] {strides = array<i32: 1, 4, 1>} : memref<2x32x8xf32, #tpu.memory_space<vmem>>, vector<2x8x8xf32>
    %c0_74 = arith.constant 0 : index
    %c0_75 = arith.constant 0 : index
    %c8_76 = arith.constant 8 : index
    %84 = vector.load %arg17[%c0_74, %c0_75, %c8_76] : memref<2x8x32xf32, #tpu.memory_space<vmem>>, vector<2x8x8xf32>
    tpu.vector_store %arg17[%c0_74, %c0_75, %c8_76], %83 {strides = array<i32>} : memref<2x8x32xf32, #tpu.memory_space<vmem>>, vector<2x8x8xf32>,
    %c0_77 = arith.constant 0 : index
    %c2 = arith.constant 2 : index
    %c0_78 = arith.constant 0 : index
    %85 = tpu.strided_load %arg16[%c0_77, %c2, %c0_78] {strides = array<i32: 1, 4, 1>} : memref<2x32x8xf32, #tpu.memory_space<vmem>>, vector<2x8x8xf32>
    %c0_79 = arith.constant 0 : index
    %c0_80 = arith.constant 0 : index
    %c16_81 = arith.constant 16 : index
    %86 = vector.load %arg17[%c0_79, %c0_80, %c16_81] : memref<2x8x32xf32, #tpu.memory_space<vmem>>, vector<2x8x8xf32>
    tpu.vector_store %arg17[%c0_79, %c0_80, %c16_81], %85 {strides = array<i32>} : memref<2x8x32xf32, #tpu.memory_space<vmem>>, vector<2x8x8xf32>,
    %c0_82 = arith.constant 0 : index
    %c3 = arith.constant 3 : index
    %c0_83 = arith.constant 0 : index
    %87 = tpu.strided_load %arg16[%c0_82, %c3, %c0_83] {strides = array<i32: 1, 4, 1>} : memref<2x32x8xf32, #tpu.memory_space<vmem>>, vector<2x8x8xf32>
    %c0_84 = arith.constant 0 : index
    %c0_85 = arith.constant 0 : index
    %c24_86 = arith.constant 24 : index
    %88 = vector.load %arg17[%c0_84, %c0_85, %c24_86] : memref<2x8x32xf32, #tpu.memory_space<vmem>>, vector<2x8x8xf32>
    tpu.vector_store %arg17[%c0_84, %c0_85, %c24_86], %87 {strides = array<i32>} : memref<2x8x32xf32, #tpu.memory_space<vmem>>, vector<2x8x8xf32>,
    %c0_87 = arith.constant 0 : index
    %c0_88 = arith.constant 0 : index
    %c0_89 = arith.constant 0 : index
    %89 = vector.load %arg17[%c0_87, %c0_88, %c0_89] : memref<2x8x32xf32, #tpu.memory_space<vmem>>, vector<2x8x32xf32>
    %90 = vector.shape_cast %89 : vector<2x8x32xf32> to vector<16x32xf32>
    %c0_90 = arith.constant 0 : index
    %c0_91 = arith.constant 0 : index
    %91 = vector.load %arg4[%c0_90, %c0_91] : memref<32x32xf32, #tpu.memory_space<vmem>>, vector<32x32xf32>
    %cst_92 = arith.constant dense<0.000000e+00> : vector<16x32xf32>
    %92 = tpu.matmul %90, %91, %cst_92 {dimension_numbers = #tpu.dot_dimension_numbers<[1], [0], [0], [1], [0, 0, 1, 1], [], []>} : vector<16x32xf32>, vector<32x32xf32>, vector<16x32xf32> -> vector<16x32xf32>
    %c0_93 = arith.constant 0 : index
    %c0_94 = arith.constant 0 : index
    %93 = vector.load %arg5[%c0_93, %c0_94] : memref<1x32xf32, #tpu.memory_space<vmem>>, vector<1x32xf32>
    %94 = vector.broadcast %93 : vector<1x32xf32> to vector<16x32xf32>
    %95 = arith.addf %92, %94 : vector<16x32xf32>
    %96 = arith.addf %1, %95 : vector<16x32xf32>
    %c0_95 = arith.constant 0 : index
    %c0_96 = arith.constant 0 : index
    %97 = vector.load %arg6[%c0_95, %c0_96] : memref<1x32xf32, #tpu.memory_space<vmem>>, vector<1x32xf32>
    %c0_97 = arith.constant 0 : index
    %c0_98 = arith.constant 0 : index
    %98 = vector.load %arg7[%c0_97, %c0_98] : memref<1x32xf32, #tpu.memory_space<vmem>>, vector<1x32xf32>
    %cst_99 = arith.constant dense<0.000000e+00> : vector<16xf32>
    %99 = vector.multi_reduction <add>, %96, %cst_99 [1] : vector<16x32xf32> to vector<16xf32>
    %100 = vector.shape_cast %99 : vector<16xf32> to vector<16x1xf32>
    %cst_100 = arith.constant 3.200000e+01 : f32
    %101 = vector.broadcast %cst_100 : f32 to vector<16x1xf32>
    %102 = arith.divf %100, %101 : vector<16x1xf32>
    %103 = vector.broadcast %102 : vector<16x1xf32> to vector<16x32xf32>
    %104 = arith.subf %96, %103 : vector<16x32xf32>
    %105 = arith.mulf %104, %104 : vector<16x32xf32>
    %cst_101 = arith.constant dense<0.000000e+00> : vector<16xf32>
    %106 = vector.multi_reduction <add>, %105, %cst_101 [1] : vector<16x32xf32> to vector<16xf32>
    %107 = vector.shape_cast %106 : vector<16xf32> to vector<16x1xf32>
    %cst_102 = arith.constant 3.200000e+01 : f32
    %108 = vector.broadcast %cst_102 : f32 to vector<16x1xf32>
    %109 = arith.divf %107, %108 : vector<16x1xf32>
    %110 = vector.broadcast %102 : vector<16x1xf32> to vector<16x32xf32>
    %111 = arith.subf %96, %110 : vector<16x32xf32>
    %cst_103 = arith.constant 9.99999974E-6 : f32
    %112 = vector.broadcast %cst_103 : f32 to vector<16x1xf32>
    %113 = arith.addf %109, %112 : vector<16x1xf32>
    %114 = math.rsqrt %113 : vector<16x1xf32>
    %115 = vector.broadcast %114 : vector<16x1xf32> to vector<16x32xf32>
    %116 = arith.mulf %111, %115 : vector<16x32xf32>
    %117 = vector.broadcast %97 : vector<1x32xf32> to vector<16x32xf32>
    %118 = arith.mulf %116, %117 : vector<16x32xf32>
    %119 = vector.broadcast %98 : vector<1x32xf32> to vector<16x32xf32>
    %120 = arith.addf %118, %119 : vector<16x32xf32>
    %c0_104 = arith.constant 0 : index
    %c0_105 = arith.constant 0 : index
    %121 = vector.load %arg8[%c0_104, %c0_105] : memref<32x128xf32, #tpu.memory_space<vmem>>, vector<32x128xf32>
    %cst_106 = arith.constant dense<0.000000e+00> : vector<16x128xf32>
    %122 = tpu.matmul %120, %121, %cst_106 {dimension_numbers = #tpu.dot_dimension_numbers<[1], [0], [0], [1], [0, 0, 1, 1], [], []>} : vector<16x32xf32>, vector<32x128xf32>, vector<16x128xf32> -> vector<16x128xf32>
    %c0_107 = arith.constant 0 : index
    %c0_108 = arith.constant 0 : index
    %123 = vector.load %arg9[%c0_107, %c0_108] : memref<1x128xf32, #tpu.memory_space<vmem>>, vector<1x128xf32>
    %124 = vector.broadcast %123 : vector<1x128xf32> to vector<16x128xf32>
    %125 = arith.addf %122, %124 : vector<16x128xf32>
    %cst_109 = arith.constant 5.000000e-01 : f32
    %126 = vector.broadcast %cst_109 : f32 to vector<16x128xf32>
    %127 = arith.mulf %126, %125 : vector<16x128xf32>
    %cst_110 = arith.constant 0.707106769 : f32
    %128 = vector.broadcast %cst_110 : f32 to vector<16x128xf32>
    %129 = arith.mulf %125, %128 : vector<16x128xf32>
    %130 = math.absf %129 : vector<16x128xf32>
    %cst_111 = arith.constant 0.327591091 : f32
    %131 = vector.broadcast %cst_111 : f32 to vector<16x128xf32>
    %132 = arith.mulf %131, %130 : vector<16x128xf32>
    %cst_112 = arith.constant 1.000000e+00 : f32
    %133 = vector.broadcast %cst_112 : f32 to vector<16x128xf32>
    %134 = arith.addf %133, %132 : vector<16x128xf32>
    %cst_113 = arith.constant 1.000000e+00 : f32
    %135 = vector.broadcast %cst_113 : f32 to vector<16x128xf32>
    %136 = arith.divf %135, %134 : vector<16x128xf32>
    %cst_114 = arith.constant 1.06140542 : f32
    %137 = vector.broadcast %cst_114 : f32 to vector<16x128xf32>
    %138 = arith.mulf %137, %136 : vector<16x128xf32>
    %cst_115 = arith.constant -1.45315206 : f32
    %139 = vector.broadcast %cst_115 : f32 to vector<16x128xf32>
    %140 = arith.addf %138, %139 : vector<16x128xf32>
    %141 = arith.mulf %140, %136 : vector<16x128xf32>
    %cst_116 = arith.constant 1.42141378 : f32
    %142 = vector.broadcast %cst_116 : f32 to vector<16x128xf32>
    %143 = arith.addf %141, %142 : vector<16x128xf32>
    %144 = arith.mulf %143, %136 : vector<16x128xf32>
    %cst_117 = arith.constant -0.284496725 : f32
    %145 = vector.broadcast %cst_117 : f32 to vector<16x128xf32>
    %146 = arith.addf %144, %145 : vector<16x128xf32>
    %147 = arith.mulf %146, %136 : vector<16x128xf32>
    %cst_118 = arith.constant 0.254829586 : f32
    %148 = vector.broadcast %cst_118 : f32 to vector<16x128xf32>
    %149 = arith.addf %147, %148 : vector<16x128xf32>
    %150 = arith.mulf %149, %136 : vector<16x128xf32>
    %cst_119 = arith.constant 0.000000e+00 : f32
    %151 = vector.broadcast %cst_119 : f32 to vector<16x128xf32>
    %152 = arith.subf %151, %130 : vector<16x128xf32>
    %153 = arith.mulf %152, %130 : vector<16x128xf32>
    %154 = math.exp %153 : vector<16x128xf32>
    %155 = arith.mulf %150, %154 : vector<16x128xf32>
    %cst_120 = arith.constant 1.000000e+00 : f32
    %156 = vector.broadcast %cst_120 : f32 to vector<16x128xf32>
    %157 = arith.subf %156, %155 : vector<16x128xf32>
    %cst_121 = arith.constant 0.000000e+00 : f32
    %158 = vector.broadcast %cst_121 : f32 to vector<16x128xf32>
    %159 = arith.cmpf olt, %129, %158 : vector<16x128xf32>
    %cst_122 = arith.constant 0.000000e+00 : f32
    %160 = vector.broadcast %cst_122 : f32 to vector<16x128xf32>
    %161 = arith.subf %160, %157 : vector<16x128xf32>
    %162 = arith.select %159, %161, %157 : vector<16x128xi1>, vector<16x128xf32>
    %cst_123 = arith.constant 1.000000e+00 : f32
    %163 = vector.broadcast %cst_123 : f32 to vector<16x128xf32>
    %164 = arith.addf %163, %162 : vector<16x128xf32>
    %165 = arith.mulf %127, %164 : vector<16x128xf32>
    %c0_124 = arith.constant 0 : index
    %c0_125 = arith.constant 0 : index
    %166 = vector.load %arg10[%c0_124, %c0_125] : memref<128x32xf32, #tpu.memory_space<vmem>>, vector<128x32xf32>
    %cst_126 = arith.constant dense<0.000000e+00> : vector<16x32xf32>
    %167 = tpu.matmul %165, %166, %cst_126 {dimension_numbers = #tpu.dot_dimension_numbers<[1], [0], [0], [1], [0, 0, 1, 1], [], []>} : vector<16x128xf32>, vector<128x32xf32>, vector<16x32xf32> -> vector<16x32xf32>
    %c0_127 = arith.constant 0 : index
    %c0_128 = arith.constant 0 : index
    %168 = vector.load %arg11[%c0_127, %c0_128] : memref<1x32xf32, #tpu.memory_space<vmem>>, vector<1x32xf32>
    %169 = vector.broadcast %168 : vector<1x32xf32> to vector<16x32xf32>
    %170 = arith.addf %167, %169 : vector<16x32xf32>
    %171 = arith.addf %120, %170 : vector<16x32xf32>
    %c0_129 = arith.constant 0 : index
    %c0_130 = arith.constant 0 : index
    %172 = vector.load %arg12[%c0_129, %c0_130] : memref<1x32xf32, #tpu.memory_space<vmem>>, vector<1x32xf32>
    %c0_131 = arith.constant 0 : index
    %c0_132 = arith.constant 0 : index
    %173 = vector.load %arg13[%c0_131, %c0_132] : memref<1x32xf32, #tpu.memory_space<vmem>>, vector<1x32xf32>
    %cst_133 = arith.constant dense<0.000000e+00> : vector<16xf32>
    %174 = vector.multi_reduction <add>, %171, %cst_133 [1] : vector<16x32xf32> to vector<16xf32>
    %175 = vector.shape_cast %174 : vector<16xf32> to vector<16x1xf32>
    %cst_134 = arith.constant 3.200000e+01 : f32
    %176 = vector.broadcast %cst_134 : f32 to vector<16x1xf32>
    %177 = arith.divf %175, %176 : vector<16x1xf32>
    %178 = vector.broadcast %177 : vector<16x1xf32> to vector<16x32xf32>
    %179 = arith.subf %171, %178 : vector<16x32xf32>
    %180 = arith.mulf %179, %179 : vector<16x32xf32>
    %cst_135 = arith.constant dense<0.000000e+00> : vector<16xf32>
    %181 = vector.multi_reduction <add>, %180, %cst_135 [1] : vector<16x32xf32> to vector<16xf32>
    %182 = vector.shape_cast %181 : vector<16xf32> to vector<16x1xf32>
    %cst_136 = arith.constant 3.200000e+01 : f32
    %183 = vector.broadcast %cst_136 : f32 to vector<16x1xf32>
    %184 = arith.divf %182, %183 : vector<16x1xf32>
    %185 = vector.broadcast %177 : vector<16x1xf32> to vector<16x32xf32>
    %186 = arith.subf %171, %185 : vector<16x32xf32>
    %cst_137 = arith.constant 9.99999974E-6 : f32
    %187 = vector.broadcast %cst_137 : f32 to vector<16x1xf32>
    %188 = arith.addf %184, %187 : vector<16x1xf32>
    %189 = math.rsqrt %188 : vector<16x1xf32>
    %190 = vector.broadcast %189 : vector<16x1xf32> to vector<16x32xf32>
    %191 = arith.mulf %186, %190 : vector<16x32xf32>
    %192 = vector.broadcast %172 : vector<1x32xf32> to vector<16x32xf32>
    %193 = arith.mulf %191, %192 : vector<16x32xf32>
    %194 = vector.broadcast %173 : vector<1x32xf32> to vector<16x32xf32>
    %195 = arith.addf %193, %194 : vector<16x32xf32>
    %196 = vector.shape_cast %195 : vector<16x32xf32> to vector<2x8x32xf32>
    %c0_138 = arith.constant 0 : index
    %c0_139 = arith.constant 0 : index
    %c0_140 = arith.constant 0 : index
    %197 = vector.load %arg14[%c0_138, %c0_139, %c0_140] : memref<2x8x32xf32, #tpu.memory_space<vmem>>, vector<2x8x32xf32>
    tpu.vector_store %arg14[%c0_138, %c0_139, %c0_140], %196 {strides = array<i32>} : memref<2x8x32xf32, #tpu.memory_space<vmem>>, vector<2x8x32xf32>,
    return
  }
  func.func @transform_0(%arg0: i32) -> (i32, i32, i32) {
    %c0_i32 = arith.constant 0 : i32
    %c0_i32_0 = arith.constant 0 : i32
    %c0_i32_1 = arith.constant 0 : i32
    return %arg0, %c0_i32, %c0_i32_0 : i32, i32, i32
  }
  func.func @transform_1(%arg0: i32) -> (i32, i32) {
    %c0_i32 = arith.constant 0 : i32
    %c0_i32_0 = arith.constant 0 : i32
    %c0_i32_1 = arith.constant 0 : i32
    return %c0_i32, %c0_i32_0 : i32, i32
  }
  func.func @transform_2(%arg0: i32) -> (i32, i32) {
    %c0_i32 = arith.constant 0 : i32
    %c0_i32_0 = arith.constant 0 : i32
    %c0_i32_1 = arith.constant 0 : i32
    return %c0_i32, %c0_i32_0 : i32, i32
  }
  func.func @transform_3(%arg0: i32) -> (i32, i32) {
    %c0_i32 = arith.constant 0 : i32
    %c0_i32_0 = arith.constant 0 : i32
    %c0_i32_1 = arith.constant 0 : i32
    return %c0_i32, %c0_i32_0 : i32, i32
  }
  func.func @transform_4(%arg0: i32) -> (i32, i32) {
    %c0_i32 = arith.constant 0 : i32
    %c0_i32_0 = arith.constant 0 : i32
    %c0_i32_1 = arith.constant 0 : i32
    return %c0_i32, %c0_i32_0 : i32, i32
  }
  func.func @transform_5(%arg0: i32) -> (i32, i32) {
    %c0_i32 = arith.constant 0 : i32
    %c0_i32_0 = arith.constant 0 : i32
    %c0_i32_1 = arith.constant 0 : i32
    return %c0_i32, %c0_i32_0 : i32, i32
  }
  func.func @transform_6(%arg0: i32) -> (i32, i32) {
    %c0_i32 = arith.constant 0 : i32
    %c0_i32_0 = arith.constant 0 : i32
    %c0_i32_1 = arith.constant 0 : i32
    return %c0_i32, %c0_i32_0 : i32, i32
  }
  func.func @transform_7(%arg0: i32) -> (i32, i32) {
    %c0_i32 = arith.constant 0 : i32
    %c0_i32_0 = arith.constant 0 : i32
    %c0_i32_1 = arith.constant 0 : i32
    return %c0_i32, %c0_i32_0 : i32, i32
  }
  func.func @transform_8(%arg0: i32) -> (i32, i32) {
    %c0_i32 = arith.constant 0 : i32
    %c0_i32_0 = arith.constant 0 : i32
    %c0_i32_1 = arith.constant 0 : i32
    return %c0_i32, %c0_i32_0 : i32, i32
  }
  func.func @transform_9(%arg0: i32) -> (i32, i32) {
    %c0_i32 = arith.constant 0 : i32
    %c0_i32_0 = arith.constant 0 : i32
    %c0_i32_1 = arith.constant 0 : i32
    return %c0_i32, %c0_i32_0 : i32, i32
  }
  func.func @transform_10(%arg0: i32) -> (i32, i32) {
    %c0_i32 = arith.constant 0 : i32
    %c0_i32_0 = arith.constant 0 : i32
    %c0_i32_1 = arith.constant 0 : i32
    return %c0_i32, %c0_i32_0 : i32, i32
  }
  func.func @transform_11(%arg0: i32) -> (i32, i32) {
    %c0_i32 = arith.constant 0 : i32
    %c0_i32_0 = arith.constant 0 : i32
    %c0_i32_1 = arith.constant 0 : i32
    return %c0_i32, %c0_i32_0 : i32, i32
  }
  func.func @transform_12(%arg0: i32) -> (i32, i32) {
    %c0_i32 = arith.constant 0 : i32
    %c0_i32_0 = arith.constant 0 : i32
    %c0_i32_1 = arith.constant 0 : i32
    return %c0_i32, %c0_i32_0 : i32, i32
  }
  func.func @transform_13(%arg0: i32) -> (i32, i32, i32) {
    %c0_i32 = arith.constant 0 : i32
    %c0_i32_0 = arith.constant 0 : i32
    %c0_i32_1 = arith.constant 0 : i32
    return %arg0, %c0_i32, %c0_i32_0 : i32, i32, i32
  }
}

</mosaic_0001>

<bundles_post_ra>
// kernel: tpu_custom_call.1
= control target key start
LH: loop header
LB: loop body
LE: loop exit
PB: predicated region body
PF: predicated region fallthrough
CT: control target
= control target key end

     0   :  { %s1507_s0 = inlined_call_operand.vmem [shape: f32[2,8,32], index: 0, kind: input, shape index: {}]   ;;  %s1508_s1 = inlined_call_operand.vmem [shape: f32[32,96], index: 1, kind: input, shape index: {}]   ;;  %s1509_s2 = inlined_call_operand.vmem [shape: f32[1,96], index: 2, kind: input, shape index: {}]   ;;  %s1510_s3 = inlined_call_operand.vmem [shape: f32[32,32], index: 3, kind: input, shape index: {}]   ;;  %s1511_s4 = inlined_call_operand.vmem [shape: f32[1,32], index: 4, kind: input, shape index: {}]   ;;  %s1512_s5 = inlined_call_operand.vmem [shape: f32[1,32], index: 5, kind: input, shape index: {}]   ;;  %s1513_s6 = inlined_call_operand.vmem [shape: f32[1,32], index: 6, kind: input, shape index: {}]   ;;  %s1514_s7 = inlined_call_operand.vmem [shape: f32[32,128], index: 7, kind: input, shape index: {}]   ;;  %s1515_s8 = inlined_call_operand.vmem [shape: f32[1,128], index: 8, kind: input, shape index: {}]   ;;  %s1516_s9 = inlined_call_operand.vmem [shape: f32[128,32], index: 9, kind: input, shape index: {}]   ;;  %s1517_s10 = inlined_call_operand.vmem [shape: f32[1,32], index: 10, kind: input, shape index: {}]   ;;  %s1518_s11 = inlined_call_operand.vmem [shape: f32[1,32], index: 11, kind: input, shape index: {}]   ;;  %s1519_s12 = inlined_call_operand.vmem [shape: f32[1,32], index: 12, kind: input, shape index: {}]   ;;  %s1520_s13 = inlined_call_operand.hbm [shape: f32[2,8,32], index: 13, kind: output, shape index: {}]  }
   0x1   :  { %v50_v0 = vld [vmem:[%s1508_s1 + $0x18] sm:$0xff]  ;;  %v49_v1 = vld [vmem:[%s1508_s1 + $0x10] sm:$0xff]  ;;  %v48_v2 = vld [vmem:[%s1508_s1 + $0x8] sm:$0xff] }
   0x2   :  { %74 = vmatpush.msra.mxu0 %v50_v0  ;;  %v47_v3 = vld [vmem:[%s1508_s1] sm:$0xff] }
   0x4   :  { %75 = vmatpush.msra.mxu0 %v49_v1 }
   0x5   :  { %18 = vsyncpa [#allocation6], 0  ;;  %v1262_v4 = vld [vmem:[%s1507_s0] sm:$0xff]  ;;  %vm55_vm0 = vcmask 261120   ;;  %v1269_v5 = vld [vmem:[%s1507_s0 + $0x8] sm:$0xff]  ;;  %vm85_vm1 = vcmask 785408  }
   0x6   :  { %76 = vmatpush.msra.mxu0 %v48_v2  ;;  %v1076_v6 = vld [vmem:[%s1509_s2] ss:$0 sm:$0xff]  ;;  %s1160_s21 = smov 96   ;;  %s1161_s0 = smov 64   ;;  %vm93_vm2 = vcmask 64512   ;;  %vm654_vm3 = vcmask 130112  }
   0x7   :  { %s1162_s2 = smov 120   ;;  %s1163_s22 = smov 88   ;;  %vm669_vm4 = vcmask 195712   ;;  %vm684_vm5 = vcmask 261312  }
   0x8   :  { %77 = vmatpush.msra.mxu0 %v47_v3  ;;  %s1164_s23 = smov 56   ;;  %s1165_s24 = smov 80  }
   0x9   :  { %1029 = vmatmul.msk.f32.vlgmr.msra.gmra.mxu0 %vm55_vm0, %v1262_v4  ;;  %s1166_s25 = smov 112   ;;  %s1167_s26 = smov 104  }
   0xa   :  { %s1168_s27 = smov 72   ;;  %s1169_s28 = smov 48  }
   0xb   :  { %s1170_s29 = smov 40   ;;  %s1171_s30 = smov 16  }
   0xc   :  { %s1172_s14 = smov 8   ;;  %s1173_s15 = smov 24  }
  0x11   :  { %1030 = vmatmul.msk.f32.gmra.mxu0 %vm55_vm0, %v1269_v5 }
  0x86   :  { %v79_v7 = vpop.f32.mrf.mxu0 }
  0x87   :  { %v80_v8 = vadd.f32 %v1076_v6, %v79_v7 }
  0x89   :  { %86 = vst.msk [vmem:[#allocation2] sm:$0xff] %vm85_vm1, %v80_v8 }
  0x8e   :  { %v82_v9 = vpop.f32.mrf.mxu0 }
  0x8f   :  { %v83_v10 = vadd.f32 %v1076_v6, %v82_v9 }
  0x90   :  { %v1276_v11 = vld [vmem:[#allocation2] sm:$0xff] }
  0x91   :  { %87 = vst.msk [vmem:[#allocation2 + $0x8] sm:$0xff] %vm85_vm1, %v83_v10  ;;  %91 = vrot.lane.b32.xlu0 %v1276_v11, %s1160_s21 }
  0x98   :  { %v1279_v12 = vld [vmem:[#allocation2 + $0x8] sm:$0xff] }
  0x99   :  { %119 = vrot.lane.b32.xlu0 %v1279_v12, %s1160_s21 }
  0xa1   :  { %169 = vrot.lane.b32.xlu0 %v1276_v11, %s1161_s0 }
  0xa9   :  { %226 = vrot.lane.b32.xlu0 %v1276_v11, %s1162_s2 }
 0x103   :  { %v92_v13 = vpop.permute.xlu0 %91 }
 0x104   :  { %1031 = vmatpush.xpose.msk.msra.mxu1 %vm93_vm2, %v92_v13 }
 0x107   :  { %1032 = vmatmul.msk.f32.vlgmr.msra.gmra.mxu1 %vm93_vm2, %v1276_v11 }
 0x10b   :  { %v120_v14 = vpop.permute.xlu0 %119 }
 0x10c   :  { %1033 = vmatpush.xpose.msk.msra.mxu2 %vm93_vm2, %v120_v14 }
 0x10f   :  { %1034 = vmatmul.msk.f32.vlgmr.msra.gmra.mxu2 %vm93_vm2, %v1279_v12 }
 0x113   :  { %v170_v15 = vpop.permute.xlu0 %169 }
 0x114   :  { %190 = vmatpush.msrb.mxu1 %v170_v15 }
 0x11b   :  { %v227_v41 = vpop.permute.xlu0 %226 }
 0x184   :  { %v115_v16 = vpop.f32.mrf.mxu1 }
 0x185   :  { %v145_v17 = vmul.f32 0.35355338, %v115_v16 }
 0x187   :  { %v147_v18 = vsel %vm93_vm2, %v145_v17, -inf }
 0x188   :  { %148 = vmax.xlane.f32.xlu1 %v147_v18 }
 0x192   :  { %v142_v19 = vpop.f32.mrf.mxu2 }
 0x193   :  { %v146_v20 = vmul.f32 0.35355338, %v142_v19 }
 0x195   :  { %v150_v21 = vsel %vm93_vm2, %v146_v20, -inf }
 0x196   :  { %151 = vmax.xlane.f32.xlu1 %v150_v21 }
 0x1af   :  { %195 = vrot.lane.b32.xlu1 %v1279_v12, %s1161_s0 }
 0x1fb   :  { %v149_v22 = vpop.xlane.xlu1 %148 }
 0x1fc   :  { %v153_v23 = vsub.f32 %v145_v17, %v149_v22 }
 0x1fe   :  { %v155_v24 = vmul.f32 1.442695, %v153_v23 }
 0x200   :  { %1084 = vpow2.f32 %v155_v24 }
 0x206   :  { %v1085_v25 = vpop.eup %1084 }
 0x207   :  { %v159_v26 = vsel %vm93_vm2, %v1085_v25, 0.0 }
 0x208   :  { %160 = vadd.xlane.f32.xlu2 %v159_v26 }
 0x209   :  { %v152_v27 = vpop.xlane.xlu1 %151 }
 0x20a   :  { %v154_v28 = vsub.f32 %v146_v20, %v152_v27 }
 0x20c   :  { %v157_v29 = vmul.f32 1.442695, %v154_v28 }
 0x20e   :  { %1086 = vpow2.f32 %v157_v29 }
 0x214   :  { %v1087_v30 = vpop.eup %1086 }
 0x215   :  { %v162_v31 = vsel %vm93_vm2, %v1087_v30, 0.0 }
 0x216   :  { %163 = vadd.xlane.f32.xlu2 %v162_v31 }
 0x221   :  { %v196_v32 = vpop.permute.xlu1 %195 }
 0x222   :  { %216 = vmatpush.msra.mxu1 %v196_v32 }
 0x22e   :  { %228 = vrot.lane.b32.xlu2 %v1276_v11, %s1163_s22 }
 0x236   :  { %257 = vrot.lane.b32.xlu2 %v1279_v12, %s1163_s22 }
 0x23e   :  { %255 = vrot.lane.b32.xlu2 %v1279_v12, %s1162_s2 }
 0x246   :  { %307 = vrot.lane.b32.xlu2 %v1276_v11, %s1164_s23 }
 0x24e   :  { %366 = vrot.lane.b32.xlu2 %v1276_v11, %s1165_s24 }
 0x256   :  { %364 = vrot.lane.b32.xlu2 %v1276_v11, %s1166_s25 }
 0x25e   :  { %502 = vrot.lane.b32.xlu2 %v1276_v11, %s1167_s26 }
 0x266   :  { %393 = vrot.lane.b32.xlu2 %v1279_v12, %s1166_s25 }
 0x26e   :  { %531 = vrot.lane.b32.xlu2 %v1279_v12, %s1167_s26 }
 0x27b   :  { %v161_v33 = vpop.xlane.xlu2 %160 }
 0x27c   :  { %1088 = vrcp.f32 %v161_v33 }
 0x282   :  { %v1089_v34 = vpop.eup %1088 }
 0x283   :  { %v167_v35 = vmul.f32 %v1089_v34, %v1085_v25 }
 0x285   :  { %1035 = vmatmul.msk.f32.vlgmr.msrb.gmra.mxu1 %vm93_vm2, %v167_v35 }
 0x289   :  { %v164_v36 = vpop.xlane.xlu2 %163 }
 0x28a   :  { %1090 = vrcp.f32 %v164_v36 }
 0x290   :  { %v1091_v37 = vpop.eup %1090 }
 0x291   :  { %v168_v38 = vmul.f32 %v1091_v37, %v1087_v30  ;;  %v229_v39 = vpop.permute.xlu2 %228 }
 0x292   :  { %1037 = vmatpush.xpose.msk.msrb.mxu1 %vm93_vm2, %v229_v39 }
 0x293   :  { %1036 = vmatmul.msk.f32.vlgmr.msra.gmra.mxu1 %vm93_vm2, %v168_v38 }
 0x299   :  { %v258_v40 = vpop.permute.xlu2 %257 }
 0x29a   :  { %1039 = vmatpush.xpose.msk.msrb.mxu2 %vm93_vm2, %v258_v40 }
 0x29b   :  { %1038 = vmatmul.msk.f32.vlgmr.msrb.gmra.mxu1 %vm93_vm2, %v227_v41 }
 0x2a1   :  { %v256_v42 = vpop.permute.xlu2 %255 }
 0x2a2   :  { %1040 = vmatmul.msk.f32.vlgmr.msrb.gmra.mxu2 %vm93_vm2, %v256_v42 }
 0x2a9   :  { %v308_v43 = vpop.permute.xlu2 %307 }
 0x2aa   :  { %328 = vmatpush.msra.mxu2 %v308_v43 }
 0x2b1   :  { %v367_v44 = vpop.permute.xlu2 %366 }
 0x2b2   :  { %1043 = vmatpush.xpose.msk.msrb.mxu2 %vm93_vm2, %v367_v44 }
 0x2b9   :  { %v365_v59 = vpop.permute.xlu2 %364 }
 0x2c1   :  { %v503_v63 = vpop.permute.xlu2 %502 }
 0x2c9   :  { %v394_v1 = vpop.permute.xlu2 %393 }
 0x2d1   :  { %v532_v3 = vpop.permute.xlu2 %531 }
 0x302   :  { %v192_v45 = vpop.f32.mrf.mxu1 }
 0x303   :  { %221 = vst.msk [vmem:[#allocation3] sm:$0xff] %vm93_vm2, %v192_v45 }
 0x310   :  { %v218_v46 = vpop.f32.mrf.mxu1 }
 0x311   :  { %222 = vst.msk [vmem:[#allocation3 + $0x20] sm:$0xff] %vm93_vm2, %v218_v46 }
 0x318   :  { %v251_v47 = vpop.f32.mrf.mxu1 }
 0x319   :  { %v283_v48 = vmul.f32 0.35355338, %v251_v47 }
 0x31b   :  { %v285_v49 = vsel %vm93_vm2, %v283_v48, -inf }
 0x31c   :  { %286 = vmax.xlane.f32.xlu0 %v285_v49 }
 0x325   :  { %v280_v50 = vpop.f32.mrf.mxu2 }
 0x326   :  { %v284_v51 = vmul.f32 0.35355338, %v280_v50 }
 0x328   :  { %v288_v52 = vsel %vm93_vm2, %v284_v51, -inf }
 0x329   :  { %289 = vmax.xlane.f32.xlu2 %v288_v52 }
 0x330   :  { %504 = vrot.lane.b32.xlu0 %v1276_v11, %s1168_s27 }
 0x338   :  { %533 = vrot.lane.b32.xlu0 %v1279_v12, %s1168_s27 }
 0x38f   :  { %v287_v53 = vpop.xlane.xlu0 %286 }
 0x390   :  { %v291_v54 = vsub.f32 %v283_v48, %v287_v53 }
 0x392   :  { %v293_v55 = vmul.f32 1.442695, %v291_v54 }
 0x394   :  { %1092 = vpow2.f32 %v293_v55 }
 0x39a   :  { %v1093_v56 = vpop.eup %1092 }
 0x39b   :  { %v297_v57 = vsel %vm93_vm2, %v1093_v56, 0.0 }
 0x39c   :  { %298 = vadd.xlane.f32.xlu1 %v297_v57  ;;  %v290_v7 = vpop.xlane.xlu2 %289 }
 0x39d   :  { %v292_v10 = vsub.f32 %v284_v51, %v290_v7 }
 0x39f   :  { %v295_v15 = vmul.f32 1.442695, %v292_v10 }
 0x3a2   :  { %v505_v62 = vpop.permute.xlu0 %504 }
 0x3aa   :  { %v534_v2 = vpop.permute.xlu0 %533 }
 0x3b5   :  { %395 = vrot.lane.b32.xlu1 %v1279_v12, %s1165_s24  ;;  %s1176_s24 = smov 128  }
 0x40f   :  { %v299_v58 = vpop.xlane.xlu1 %298 }
 0x410   :  { %1094 = vrcp.f32 %v299_v58 }
 0x411   :  { %1096 = vpow2.f32 %v295_v15 }
 0x416   :  { %v1095_v60 = vpop.eup %1094 }
 0x417   :  { %v305_v61 = vmul.f32 %v1095_v60, %v1093_v56  ;;  %v1097_v24 = vpop.eup %1096 }
 0x418   :  { %v300_v25 = vsel %vm93_vm2, %v1097_v24, 0.0 }
 0x419   :  { %1041 = vmatmul.msk.f32.vlgmr.msra.gmra.mxu2 %vm93_vm2, %v305_v61 }
 0x41a   :  { %1049 = vmatpush.xpose.msk.msra.mxu2 %vm93_vm2, %v505_v62 }
 0x421   :  { %1044 = vmatmul.msk.f32.vlgmr.msrb.gmra.mxu2 %vm93_vm2, %v365_v59 }
 0x427   :  { %v396_v0 = vpop.permute.xlu1 %395 }
 0x428   :  { %1045 = vmatpush.xpose.msk.msrb.mxu0 %vm93_vm2, %v396_v0 }
 0x429   :  { %1050 = vmatmul.msk.f32.vlgmr.msra.gmra.mxu2 %vm93_vm2, %v503_v63 }
 0x42b   :  { %1046 = vmatmul.msk.f32.vlgmr.msrb.gmra.mxu0 %vm93_vm2, %v394_v1 }
 0x42c   :  { %1051 = vmatpush.xpose.msk.msra.mxu0 %vm93_vm2, %v534_v2 }
 0x433   :  { %1052 = vmatmul.msk.f32.vlgmr.msra.gmra.mxu0 %vm93_vm2, %v532_v3 }
 0x49c   :  { %v330_v6 = vpop.f32.mrf.mxu2 }
 0x49d   :  { %359 = vst.msk [vmem:[#allocation3 + $0x8] sm:$0xff] %vm93_vm2, %v330_v6 }
 0x4a4   :  { %v389_v8 = vpop.f32.mrf.mxu2 }
 0x4a5   :  { %v421_v9 = vmul.f32 0.35355338, %v389_v8 }
 0x4a7   :  { %v423_v13 = vsel %vm93_vm2, %v421_v9, -inf }
 0x4a8   :  { %424 = vmax.xlane.f32.xlu0 %v423_v13  ;;  %v418_v14 = vpop.f32.mrf.mxu0 }
 0x4a9   :  { %v422_v16 = vmul.f32 0.35355338, %v418_v14 }
 0x4ab   :  { %v426_v19 = vsel %vm93_vm2, %v422_v16, -inf }
 0x4ac   :  { %v527_v17 = vpop.f32.mrf.mxu2 }
 0x4ad   :  { %v559_v18 = vmul.f32 0.35355338, %v527_v17  ;;  %v692_v17 = vld [vmem:[%s1510_s3 + $0x18] sm:$0xff] }
 0x4ae   :  { %715 = vmatpush.msrb.mxu2 %v692_v17 }
 0x4af   :  { %v561_v20 = vsel %vm93_vm2, %v559_v18, -inf }
 0x4b0   :  { %427 = vmax.xlane.f32.xlu0 %v426_v19  ;;  %562 = vmax.xlane.f32.xlu1 %v561_v20  ;;  %v556_v21 = vpop.f32.mrf.mxu0  ;;  %v690_v19 = vld [vmem:[%s1510_s3 + $0x8] sm:$0xff]  ;;  %v689_v20 = vld [vmem:[%s1510_s3] sm:$0xff] }
 0x4b1   :  { %v560_v22 = vmul.f32 0.35355338, %v556_v21 }
 0x4b3   :  { %v564_v23 = vsel %vm93_vm2, %v560_v22, -inf }
 0x4b4   :  { %565 = vmax.xlane.f32.xlu2 %v564_v23 }
 0x4b8   :  { %301 = vadd.xlane.f32.xlu0 %v300_v25 }
 0x4cc   :  { %333 = vrot.lane.b32.xlu2 %v1279_v12, %s1164_s23  ;;  %s1017_s23 = sshll.u32 %s1520_s13, 4  ;;  %s1018_s23 = int_to_ptr.hbm [resolvable:$true] %s1017_s23 }
 0x51b   :  { %v425_v26 = vpop.xlane.xlu0 %424 }
 0x51c   :  { %v429_v27 = vsub.f32 %v421_v9, %v425_v26 }
 0x51e   :  { %v431_v28 = vmul.f32 1.442695, %v429_v27 }
 0x520   :  { %1098 = vpow2.f32 %v431_v28 }
 0x523   :  { %v563_v29 = vpop.xlane.xlu1 %562  ;;  %v428_v30 = vpop.xlane.xlu0 %427 }
 0x524   :  { %v567_v31 = vsub.f32 %v559_v18, %v563_v29  ;;  %v430_v32 = vsub.f32 %v422_v16, %v428_v30  ;;  %v691_v18 = vld [vmem:[%s1510_s3 + $0x10] sm:$0xff]  ;;  %v1077_v29 = vld [vmem:[%s1511_s4] ss:$0 sm:$0xff] }
 0x525   :  { %716 = vmatpush.msrb.mxu2 %v691_v18 }
 0x526   :  { %v1099_v33 = vpop.eup %1098  ;;  %v569_v34 = vmul.f32 1.442695, %v567_v31  ;;  %v433_v35 = vmul.f32 1.442695, %v430_v32 }
 0x527   :  { %v566_v36 = vpop.xlane.xlu2 %565  ;;  %v435_v37 = vsel %vm93_vm2, %v1099_v33, 0.0  ;;  %717 = vmatpush.msrb.mxu2 %v690_v19 }
 0x528   :  { %1100 = vpow2.f32 %v569_v34  ;;  %436 = vadd.xlane.f32.xlu1 %v435_v37  ;;  %v568_v46 = vsub.f32 %v560_v22, %v566_v36 }
 0x529   :  { %1102 = vpow2.f32 %v433_v35  ;;  %718 = vmatpush.msrb.mxu2 %v689_v20 }
 0x52a   :  { %v571_v47 = vmul.f32 1.442695, %v568_v46 }
 0x52b   :  { %v302_v38 = vpop.xlane.xlu0 %301 }
 0x52c   :  { %1104 = vrcp.f32 %v302_v38  ;;  %v1174_v38 = vmov 32.0  }
 0x52d   :  { %1106 = vpow2.f32 %v571_v47 }
 0x52e   :  { %v1101_v39 = vpop.eup %1100 }
 0x52f   :  { %v1103_v40 = vpop.eup %1102  ;;  %v334_v41 = vpop.permute.xlu2 %333  ;;  %v573_v42 = vsel %vm93_vm2, %v1101_v39, 0.0 }
 0x530   :  { %574 = vadd.xlane.f32.xlu2 %v573_v42  ;;  %354 = vmatpush.msra.mxu1 %v334_v41  ;;  %v438_v43 = vsel %vm93_vm2, %v1103_v40, 0.0 }
 0x531   :  { %439 = vadd.xlane.f32.xlu0 %v438_v43 }
 0x532   :  { %v1105_v44 = vpop.eup %1104 }
 0x533   :  { %v306_v45 = vmul.f32 %v1105_v44, %v1097_v24  ;;  %v1107_v48 = vpop.eup %1106 }
 0x534   :  { %v576_v49 = vsel %vm93_vm2, %v1107_v48, 0.0 }
 0x535   :  { %1042 = vmatmul.msk.f32.vlgmr.msra.gmra.mxu1 %vm93_vm2, %v306_v45 }
 0x541   :  { %445 = vrot.lane.b32.xlu1 %v1276_v11, %s1169_s28 }
 0x545   :  { %583 = vrot.lane.b32.xlu0 %v1276_v11, %s1170_s29 }
 0x548   :  { %471 = vrot.lane.b32.xlu2 %v1279_v12, %s1169_s28 }
 0x54d   :  { %609 = vrot.lane.b32.xlu0 %v1279_v12, %s1170_s29 }
 0x56b   :  { %577 = vadd.xlane.f32.xlu1 %v576_v49 }
 0x59b   :  { %v437_v52 = vpop.xlane.xlu1 %436 }
 0x5a3   :  { %v575_v50 = vpop.xlane.xlu2 %574 }
 0x5a4   :  { %v440_v51 = vpop.xlane.xlu0 %439 }
 0x5a5   :  { %1108 = vrcp.f32 %v440_v51 }
 0x5a6   :  { %1110 = vrcp.f32 %v437_v52 }
 0x5a7   :  { %1112 = vrcp.f32 %v575_v50 }
 0x5ab   :  { %v1109_v53 = vpop.eup %1108  ;;  %v472_v54 = vpop.permute.xlu2 %471 }
 0x5ac   :  { %v444_v55 = vmul.f32 %v1109_v53, %v1103_v40  ;;  %492 = vmatpush.msrb.mxu1 %v472_v54  ;;  %v1111_v11 = vpop.eup %1110  ;;  %v794_v53 = vld [vmem:[%s1514_s7 + $0x18] sm:$0xff]  ;;  %v793_v54 = vld [vmem:[%s1514_s7 + $0x10] sm:$0xff] }
 0x5ad   :  { %v443_v57 = vmul.f32 %v1111_v11, %v1099_v33  ;;  %v1113_v59 = vpop.eup %1112  ;;  %817 = vmatpush.msrb.mxu0 %v794_v53  ;;  %v791_v11 = vld [vmem:[%s1514_s7] sm:$0xff] }
 0x5ae   :  { %1048 = vmatmul.msk.f32.vlgmr.msrb.gmra.mxu1 %vm93_vm2, %v444_v55  ;;  %v581_v60 = vmul.f32 %v1113_v59, %v1101_v39  ;;  %v792_v55 = vld [vmem:[%s1514_s7 + $0x8] sm:$0xff] }
 0x5af   :  { %818 = vmatpush.msrb.mxu0 %v793_v54 }
 0x5b1   :  { %819 = vmatpush.msrb.mxu0 %v792_v55 }
 0x5b2   :  { %v356_v12 = vpop.f32.mrf.mxu1 }
 0x5b3   :  { %v446_v56 = vpop.permute.xlu1 %445  ;;  %360 = vst.msk [vmem:[#allocation3 + $0x28] sm:$0xff] %vm93_vm2, %v356_v12  ;;  %820 = vmatpush.msrb.mxu0 %v791_v11 }
 0x5b4   :  { %466 = vmatpush.msra.mxu3 %v446_v56 }
 0x5b5   :  { %1047 = vmatmul.msk.f32.vlgmr.msra.gmra.mxu3 %vm93_vm2, %v443_v57 }
 0x5b7   :  { %v584_v58 = vpop.permute.xlu0 %583 }
 0x5b8   :  { %604 = vmatpush.msrb.mxu3 %v584_v58 }
 0x5bd   :  { %1053 = vmatmul.msk.f32.vlgmr.msrb.gmra.mxu3 %vm93_vm2, %v581_v60 }
 0x5bf   :  { %v610_v61 = vpop.permute.xlu0 %609 }
 0x5c0   :  { %630 = vmatpush.msra.mxu1 %v610_v61 }
 0x5de   :  { %v578_v62 = vpop.xlane.xlu1 %577 }
 0x5df   :  { %1114 = vrcp.f32 %v578_v62 }
 0x5e0   :  { %1116 = vrcp.f32 %v1174_v38  ;;  %v915_v38 = vld [vmem:[%s1516_s9 + $0x38] sm:$0xff] }
 0x5e5   :  { %v1115_v63 = vpop.eup %1114 }
 0x5e6   :  { %v582_v0 = vmul.f32 %v1115_v63, %v1107_v48  ;;  %v1117_v39 = vpop.eup %1116 }
 0x5e7   :  { %v737_v40 = vmul.f32 32.0, %v1117_v39  ;;  %vm741_vm6 = vweird.f32 %v1117_v39 }
 0x5e8   :  { %1054 = vmatmul.msk.f32.vlgmr.msra.gmra.mxu1 %vm93_vm2, %v582_v0  ;;  %v1078_v0 = vld [vmem:[%s1512_s5] ss:$0 sm:$0xff] }
 0x5e9   :  { %v738_v41 = vsub.f32 1.0, %v737_v40  ;;  %v913_v40 = vld [vmem:[%s1516_s9 + $0x28] sm:$0xff] }
 0x5eb   :  { %v739_v42 = vmul.f32 %v1117_v39, %v738_v41  ;;  %v912_v41 = vld [vmem:[%s1516_s9 + $0x20] sm:$0xff] }
 0x5ed   :  { %v740_v43 = vadd.f32 %v1117_v39, %v739_v42 }
 0x5ef   :  { %v1385_v44 = vsel %vm741_vm6, %v1117_v39, %v740_v43  ;;  %v914_v39 = vld [vmem:[%s1516_s9 + $0x30] sm:$0xff] }
 0x62b   :  { %v494_v1 = vpop.f32.mrf.mxu1 }
 0x62c   :  { %498 = vst.msk [vmem:[#allocation3 + $0x30] sm:$0xff] %vm93_vm2, %v494_v1 }
 0x638   :  { %v468_v2 = vpop.f32.mrf.mxu3 }
 0x639   :  { %497 = vst.msk [vmem:[#allocation3 + $0x10] sm:$0xff] %vm93_vm2, %v468_v2 }
 0x640   :  { %v606_v3 = vpop.f32.mrf.mxu3 }
 0x641   :  { %635 = vst.msk [vmem:[#allocation3 + $0x18] sm:$0xff] %vm93_vm2, %v606_v3  ;;  %v1079_v3 = vld [vmem:[%s1513_s6] ss:$0 sm:$0xff] }
 0x648   :  { %v658_v6 = vld [vmem:[#allocation3 + $0x2] ss:$4 sm:$0xff]  ;;  %v643_v7 = vld [vmem:[#allocation3 + $0x1] ss:$4 sm:$0xff]  ;;  %v637_v8 = vld [vmem:[#allocation3] ss:$4 sm:$0xff] }
 0x649   :  { %663 = vrot.lane.b32.xlu0 %v658_v6, %s1171_s30  ;;  %648 = vrot.lane.b32.xlu2 %v643_v7, %s1172_s14  ;;  %640 = vst.msk [vmem:[#allocation4] sm:$0xff] %vm93_vm2, %v637_v8  ;;  %v673_v9 = vld [vmem:[#allocation3 + $0x3] ss:$4 sm:$0xff] }
 0x651   :  { %678 = vrot.lane.b32.xlu2 %v673_v9, %s1173_s15 }
 0x665   :  { %v632_v10 = vpop.f32.mrf.mxu1 }
 0x666   :  { %636 = vst.msk [vmem:[#allocation3 + $0x38] sm:$0xff] %vm93_vm2, %v632_v10 }
 0x66d   :  { %v660_v13 = vld [vmem:[#allocation3 + $0x22] ss:$4 sm:$0xff]  ;;  %v645_v14 = vld [vmem:[#allocation3 + $0x21] ss:$4 sm:$0xff]  ;;  %v639_v15 = vld [vmem:[#allocation3 + $0x20] ss:$4 sm:$0xff] }
 0x66e   :  { %665 = vrot.lane.b32.xlu2 %v660_v13, %s1171_s30  ;;  %650 = vrot.lane.b32.xlu0 %v645_v14, %s1172_s14  ;;  %641 = vst.msk [vmem:[#allocation4 + $0x8] sm:$0xff] %vm93_vm2, %v639_v15  ;;  %v675_v16 = vld [vmem:[#allocation3 + $0x23] ss:$4 sm:$0xff] }
 0x676   :  { %680 = vrot.lane.b32.xlu0 %v675_v16, %s1173_s15 }
 0x6a3   :  { %v649_v21 = vpop.permute.xlu2 %648 }
 0x6a4   :  { %655 = vst.msk [vmem:[#allocation4] sm:$0xff] %vm654_vm3, %v649_v21 }
 0x6ab   :  { %v679_v23 = vpop.permute.xlu2 %678 }
 0x6bb   :  { %v664_v22 = vpop.permute.xlu0 %663 }
 0x6bc   :  { %670 = vst.msk [vmem:[#allocation4] sm:$0xff] %vm669_vm4, %v664_v22 }
 0x6bd   :  { %685 = vst.msk [vmem:[#allocation4] sm:$0xff] %vm684_vm5, %v679_v23  ;;  %v923_v23 = vld [vmem:[%s1516_s9 + $0x78] sm:$0xff] }
 0x6be   :  { %928 = vmatpush.msra.mxu3 %v923_v23 }
 0x6c4   :  { %v687_v24 = vld [vmem:[#allocation4] sm:$0xff] }
 0x6c5   :  { %1055 = vmatmul.msk.f32.vlgmr.msrb.gmra.mxu2 %vm55_vm0, %v687_v24  ;;  %v922_v24 = vld [vmem:[%s1516_s9 + $0x70] sm:$0xff] }
 0x6c6   :  { %929 = vmatpush.msra.mxu3 %v922_v24 }
 0x6c8   :  { %v666_v26 = vpop.permute.xlu2 %665 }
 0x6e0   :  { %v651_v25 = vpop.permute.xlu0 %650 }
 0x6e1   :  { %656 = vst.msk [vmem:[#allocation4 + $0x8] sm:$0xff] %vm654_vm3, %v651_v25  ;;  %v1428_v25 = vld [vmem:[%s1515_s8] ss:$0 sm:$0xff] }
 0x6e2   :  { %671 = vst.msk [vmem:[#allocation4 + $0x8] sm:$0xff] %vm669_vm4, %v666_v26  ;;  %v921_v26 = vld [vmem:[%s1516_s9 + $0x68] sm:$0xff] }
 0x6e3   :  { %930 = vmatpush.msra.mxu3 %v921_v26 }
 0x6e8   :  { %v681_v27 = vpop.permute.xlu0 %680 }
 0x6e9   :  { %686 = vst.msk [vmem:[#allocation4 + $0x8] sm:$0xff] %vm684_vm5, %v681_v27 }
 0x6f0   :  { %v688_v28 = vld [vmem:[#allocation4 + $0x8] sm:$0xff] }
 0x6f1   :  { %1056 = vmatmul.msk.f32.gmra.mxu2 %vm55_vm0, %v688_v28  ;;  %v920_v28 = vld [vmem:[%s1516_s9 + $0x60] sm:$0xff] }
 0x6f2   :  { %931 = vmatpush.msra.mxu3 %v920_v28 }
 0x748   :  { %v720_v30 = vpop.f32.mrf.mxu2 }
 0x749   :  { %v721_v31 = vadd.f32 %v1077_v29, %v720_v30  ;;  %v919_v30 = vld [vmem:[%s1516_s9 + $0x58] sm:$0xff] }
 0x74a   :  { %932 = vmatpush.msra.mxu3 %v919_v30 }
 0x74b   :  { %v726_v32 = vadd.f32 %v721_v31, %v1262_v4 }
 0x74d   :  { %v730_v33 = vsel %vm55_vm0, %v726_v32, 0.0 }
 0x74e   :  { %731 = vadd.xlane.f32.xlu2 %v730_v33 }
 0x774   :  { %v723_v34 = vpop.f32.mrf.mxu2 }
 0x775   :  { %v724_v35 = vadd.f32 %v1077_v29, %v723_v34  ;;  %v917_v34 = vld [vmem:[%s1516_s9 + $0x48] sm:$0xff] }
 0x777   :  { %v727_v36 = vadd.f32 %v724_v35, %v1269_v5 }
 0x779   :  { %v733_v37 = vsel %vm55_vm0, %v727_v36, 0.0 }
 0x77a   :  { %734 = vadd.xlane.f32.xlu0 %v733_v37 }
 0x7c1   :  { %v732_v4 = vpop.xlane.xlu2 %731 }
 0x7c2   :  { %v743_v45 = vmul.f32 %v1385_v44, %v732_v4  ;;  %v911_v4 = vld [vmem:[%s1516_s9 + $0x18] sm:$0xff] }
 0x7c4   :  { %v745_v46 = vsub.f32 %v726_v32, %v743_v45  ;;  %v918_v32 = vld [vmem:[%s1516_s9 + $0x50] sm:$0xff] }
 0x7c5   :  { %933 = vmatpush.msra.mxu3 %v918_v32 }
 0x7c6   :  { %v747_v47 = vmul.f32 %v745_v46, %v745_v46 }
 0x7c7   :  { %934 = vmatpush.msra.mxu3 %v917_v34 }
 0x7c8   :  { %v749_v5 = vsel %vm55_vm0, %v747_v47, 0.0 }
 0x7c9   :  { %750 = vadd.xlane.f32.xlu1 %v749_v5 }
 0x7ed   :  { %v735_v48 = vpop.xlane.xlu0 %734 }
 0x7ee   :  { %v744_v49 = vmul.f32 %v1385_v44, %v735_v48 }
 0x7f0   :  { %v746_v50 = vsub.f32 %v727_v36, %v744_v49  ;;  %v916_v36 = vld [vmem:[%s1516_s9 + $0x40] sm:$0xff]  ;;  %v909_v49 = vld [vmem:[%s1516_s9 + $0x8] sm:$0xff] }
 0x7f1   :  { %935 = vmatpush.msra.mxu3 %v916_v36 }
 0x7f2   :  { %v748_v51 = vmul.f32 %v746_v50, %v746_v50 }
 0x7f3   :  { %936 = vmatpush.msra.mxu3 %v915_v38 }
 0x7f4   :  { %v752_v52 = vsel %vm55_vm0, %v748_v51, 0.0  ;;  %v908_v51 = vld [vmem:[%s1516_s9] sm:$0xff] }
 0x7f5   :  { %753 = vadd.xlane.f32.xlu1 %v752_v52  ;;  %937 = vmatpush.msra.mxu3 %v914_v39 }
 0x7f7   :  { %938 = vmatpush.msra.mxu3 %v913_v40 }
 0x7f9   :  { %939 = vmatpush.msra.mxu3 %v912_v41 }
 0x7fb   :  { %940 = vmatpush.msra.mxu3 %v911_v4 }
 0x83c   :  { %v751_v12 = vpop.xlane.xlu1 %750 }
 0x83d   :  { %v755_v56 = vmul.f32 %v751_v12, %v1385_v44 }
 0x83f   :  { %v757_v57 = vadd.f32 1e-05, %v755_v56 }
 0x841   :  { %1118 = vrsqrt.f32 %v757_v57  ;;  %vm765_vm8 = vweird.f32 %v757_v57 }
 0x847   :  { %v1119_v58 = vpop.eup %1118 }
 0x848   :  { %v760_v59 = vmul.f32 %v1119_v58, %v757_v57  ;;  %vm766_vm7 = vweird.f32 %v1119_v58 }
 0x849   :  { %vm767_vm9 = vmor %vm765_vm8, %vm766_vm7 }
 0x84a   :  { %v761_v60 = vmul.f32 %v1119_v58, %v760_v59 }
 0x84c   :  { %v762_v61 = vmul.f32 0.5, %v761_v60 }
 0x84e   :  { %v763_v62 = vsub.f32 1.5, %v762_v61 }
 0x850   :  { %v764_v63 = vmul.f32 %v1119_v58, %v763_v62 }
 0x852   :  { %v768_v1 = vsel %vm767_vm9, %v1119_v58, %v764_v63 }
 0x853   :  { %v779_v2 = vmul.f32 %v768_v1, %v745_v46  ;;  %v910_v46 = vld [vmem:[%s1516_s9 + $0x10] sm:$0xff] }
 0x854   :  { %941 = vmatpush.msra.mxu3 %v910_v46 }
 0x855   :  { %v784_v6 = vmul.f32 %v1078_v0, %v779_v2 }
 0x856   :  { %942 = vmatpush.msra.mxu3 %v909_v49 }
 0x857   :  { %v1410_v7 = vadd.f32 %v1079_v3, %v784_v6 }
 0x858   :  { %943 = vmatpush.msra.mxu3 %v908_v51 }
 0x859   :  { %1057 = vmatmul.msk.f32.vlgmr.msrb.gmra.mxu0 %vm55_vm0, %v1410_v7 }
 0x868   :  { %v754_v8 = vpop.xlane.xlu1 %753 }
 0x869   :  { %v756_v9 = vmul.f32 %v754_v8, %v1385_v44 }
 0x86b   :  { %v758_v10 = vadd.f32 1e-05, %v756_v9 }
 0x86d   :  { %1120 = vrsqrt.f32 %v758_v10  ;;  %vm775_vm11 = vweird.f32 %v758_v10 }
 0x873   :  { %v1121_v13 = vpop.eup %1120 }
 0x874   :  { %v770_v14 = vmul.f32 %v1121_v13, %v758_v10  ;;  %vm776_vm10 = vweird.f32 %v1121_v13 }
 0x875   :  { %vm777_vm12 = vmor %vm775_vm11, %vm776_vm10 }
 0x876   :  { %v771_v15 = vmul.f32 %v1121_v13, %v770_v14 }
 0x878   :  { %v772_v16 = vmul.f32 0.5, %v771_v15 }
 0x87a   :  { %v773_v17 = vsub.f32 1.5, %v772_v16 }
 0x87c   :  { %v774_v18 = vmul.f32 %v1121_v13, %v773_v17 }
 0x87e   :  { %v778_v19 = vsel %vm777_vm12, %v1121_v13, %v774_v18 }
 0x87f   :  { %v780_v20 = vmul.f32 %v778_v19, %v746_v50 }
 0x881   :  { %v785_v21 = vmul.f32 %v1078_v0, %v780_v20 }
 0x883   :  { %v1415_v22 = vadd.f32 %v1079_v3, %v785_v21 }
 0x885   :  { %1058 = vmatmul.msk.f32.gmra.mxu0 %vm55_vm0, %v1415_v22 }
 0x8d6   :  { %v822_v27 = vpop.f32.mrf.mxu0 }
 0x8d7   :  { %v1437_v29 = vadd.f32 %v1428_v25, %v822_v27 }
 0x8d9   :  { %v1443_v31 = vmul.f32 0.70710677, %v1437_v29  ;;  %v828_v16 = vmul.f32 0.5, %v1437_v29 }
 0x8db   :  { %v832_v33 = vand.u32 2147483647, %v1443_v31  ;;  %vm898_vm2 = vcmp.lt.f32.partialorder %v1443_v31, 0.0 }
 0x8dd   :  { %v834_v35 = vmul.f32 0.3275911, %v832_v33  ;;  %v886_v55 = vsub.f32 0.0, %v832_v33 }
 0x8df   :  { %v836_v37 = vadd.f32 1.0, %v834_v35  ;;  %v888_v56 = vmul.f32 %v886_v55, %v832_v33 }
 0x8e1   :  { %1122 = vrcp.f32 %v836_v37  ;;  %v849_v47 = vand.u32 2147483648, %v836_v37  ;;  %v847_v48 = vand.u32 2147483647, %v836_v37  ;;  %vm843_vm14 = vweird.f32 %v836_v37 }
 0x8e2   :  { %v890_v59 = vmul.f32 1.442695, %v888_v56 }
 0x8e3   :  { %v850_v52 = vor.u32 1.1754944e-38, %v849_v47  ;;  %vm848_vm1 = vcmp.eq.f32.partialorder %v847_v48, 8.507059e+37 }
 0x8e4   :  { %1124 = vpow2.f32 %v890_v59 }
 0x8e7   :  { %v1123_v42 = vpop.eup %1122 }
 0x8e8   :  { %v839_v43 = vmul.f32 %v1123_v42, %v836_v37  ;;  %vm844_vm13 = vweird.f32 %v1123_v42 }
 0x8e9   :  { %vm845_vm15 = vmor %vm843_vm14, %vm844_vm13 }
 0x8ea   :  { %v840_v45 = vsub.f32 1.0, %v839_v43  ;;  %v1125_v2 = vpop.eup %1124 }
 0x8ec   :  { %v841_v5 = vmul.f32 %v1123_v42, %v840_v45 }
 0x8ee   :  { %v842_v50 = vadd.f32 %v1123_v42, %v841_v5 }
 0x8f0   :  { %v846_v53 = vsel %vm845_vm15, %v1123_v42, %v842_v50  ;;  %v1081_v50 = vld [vmem:[%s1517_s10] ss:$0 sm:$0xff] }
 0x8f1   :  { %v851_v54 = vsel %vm848_vm1, %v850_v52, %v846_v53 }
 0x8f2   :  { %v868_v11 = vmul.f32 1.0614054, %v851_v54 }
 0x8f4   :  { %v870_v12 = vadd.f32 -1.4531521, %v868_v11 }
 0x8f6   :  { %v872_v57 = vmul.f32 %v870_v12, %v851_v54 }
 0x8f8   :  { %v874_v58 = vadd.f32 1.4214138, %v872_v57 }
 0x8fa   :  { %v876_v60 = vmul.f32 %v874_v58, %v851_v54 }
 0x8fc   :  { %v878_v61 = vadd.f32 -0.28449672, %v876_v60 }
 0x8fe   :  { %v880_v62 = vmul.f32 %v878_v61, %v851_v54 }
 0x900   :  { %v882_v63 = vadd.f32 0.2548296, %v880_v62 }
 0x902   :  { %v884_v0 = vmul.f32 %v882_v63, %v851_v54  ;;  %v825_v1 = vpop.f32.mrf.mxu0 }
 0x903   :  { %v826_v3 = vadd.f32 %v1428_v25, %v825_v1 }
 0x904   :  { %v894_v6 = vmul.f32 %v1125_v2, %v884_v0 }
 0x905   :  { %v831_v8 = vmul.f32 0.70710677, %v826_v3  ;;  %v829_v5 = vmul.f32 0.5, %v826_v3 }
 0x906   :  { %v896_v9 = vsub.f32 1.0, %v894_v6 }
 0x907   :  { %v833_v10 = vand.u32 2147483647, %v831_v8  ;;  %vm899_vm7 = vcmp.lt.f32.partialorder %v831_v8, 0.0 }
 0x908   :  { %v900_v13 = vsub.f32 0.0, %v896_v9 }
 0x909   :  { %v835_v14 = vmul.f32 0.3275911, %v833_v10  ;;  %v887_v31 = vsub.f32 0.0, %v833_v10 }
 0x90a   :  { %v902_v15 = vsel %vm898_vm2, %v900_v13, %v896_v9 }
 0x90b   :  { %v904_v17 = vadd.f32 1.0, %v902_v15  ;;  %v837_v18 = vadd.f32 1.0, %v835_v14  ;;  %v889_v34 = vmul.f32 %v887_v31, %v833_v10  ;;  %v1082_v15 = vld [vmem:[%s1518_s11] ss:$0 sm:$0xff]  ;;  %s1175_s11 = smov [#allocation5]  }
 0x90d   :  { %v906_v19 = vmul.f32 %v904_v17, %v828_v16  ;;  %1126 = vrcp.f32 %v837_v18  ;;  %v864_v24 = vand.u32 2147483648, %v837_v18  ;;  %v862_v26 = vand.u32 2147483647, %v837_v18 }
 0x90e   :  { %vm858_vm4 = vweird.f32 %v837_v18  ;;  %v892_v37 = vmul.f32 1.442695, %v889_v34 }
 0x90f   :  { %944 = vmatmul.f32.vlgmr.msra.gmra.mxu3 %v906_v19  ;;  %v865_v28 = vor.u32 1.1754944e-38, %v864_v24  ;;  %vm863_vm6 = vcmp.eq.f32.partialorder %v862_v26, 8.507059e+37 }
 0x910   :  { %1128 = vpow2.f32 %v892_v37 }
 0x913   :  { %v1127_v20 = vpop.eup %1126 }
 0x914   :  { %v854_v21 = vmul.f32 %v1127_v20, %v837_v18  ;;  %vm859_vm3 = vweird.f32 %v1127_v20  ;;  %v1083_v18 = vld [vmem:[%s1519_s12] ss:$0 sm:$0xff]  ;;  %s1015_s12 = sshll.u32 %s1175_s11, 4  ;;  %s1016_s12 = int_to_ptr.vmem [resolvable:$true] %s1015_s12 }
 0x915   :  { %vm860_vm5 = vmor %vm858_vm4, %vm859_vm3 }
 0x916   :  { %v855_v23 = vsub.f32 1.0, %v854_v21  ;;  %v1129_v43 = vpop.eup %1128 }
 0x918   :  { %v856_v25 = vmul.f32 %v1127_v20, %v855_v23 }
 0x91a   :  { %v857_v27 = vadd.f32 %v1127_v20, %v856_v25 }
 0x91c   :  { %v861_v30 = vsel %vm860_vm5, %v1127_v20, %v857_v27 }
 0x91d   :  { %v866_v29 = vsel %vm863_vm6, %v865_v28, %v861_v30 }
 0x91e   :  { %v869_v32 = vmul.f32 1.0614054, %v866_v29 }
 0x920   :  { %v871_v33 = vadd.f32 -1.4531521, %v869_v32 }
 0x922   :  { %v873_v35 = vmul.f32 %v871_v33, %v866_v29 }
 0x924   :  { %v875_v36 = vadd.f32 1.4214138, %v873_v35 }
 0x926   :  { %v877_v38 = vmul.f32 %v875_v36, %v866_v29 }
 0x928   :  { %v879_v39 = vadd.f32 -0.28449672, %v877_v38 }
 0x92a   :  { %v881_v40 = vmul.f32 %v879_v39, %v866_v29 }
 0x92c   :  { %v883_v41 = vadd.f32 0.2548296, %v881_v40 }
 0x92e   :  { %v885_v42 = vmul.f32 %v883_v41, %v866_v29 }
 0x930   :  { %v895_v4 = vmul.f32 %v1129_v43, %v885_v42 }
 0x932   :  { %v897_v45 = vsub.f32 1.0, %v895_v4 }
 0x934   :  { %v901_v46 = vsub.f32 0.0, %v897_v45 }
 0x936   :  { %v903_v47 = vsel %vm899_vm7, %v901_v46, %v897_v45 }
 0x937   :  { %v905_v48 = vadd.f32 1.0, %v903_v47 }
 0x939   :  { %v907_v49 = vmul.f32 %v905_v48, %v829_v5 }
 0x93b   :  { %947 = vmatmul.f32.gmra.mxu3 %v907_v49 }
 0x992   :  { %v945_v51 = vpop.f32.mrf.mxu3 }
 0x993   :  { %v946_v52 = vadd.f32 %v1081_v50, %v945_v51 }
 0x995   :  { %v951_v53 = vadd.f32 %v946_v52, %v1410_v7 }
 0x997   :  { %v955_v54 = vsel %vm55_vm0, %v951_v53, 0.0 }
 0x998   :  { %956 = vadd.xlane.f32.xlu1 %v955_v54 }
 0x9be   :  { %v948_v55 = vpop.f32.mrf.mxu3 }
 0x9bf   :  { %v949_v11 = vadd.f32 %v1081_v50, %v948_v55 }
 0x9c1   :  { %v952_v12 = vadd.f32 %v949_v11, %v1415_v22 }
 0x9c3   :  { %v958_v56 = vsel %vm55_vm0, %v952_v12, 0.0 }
 0x9c4   :  { %959 = vadd.xlane.f32.xlu1 %v958_v56 }
 0xa0b   :  { %v957_v57 = vpop.xlane.xlu1 %956 }
 0xa0c   :  { %v961_v58 = vmul.f32 %v957_v57, %v1385_v44 }
 0xa0e   :  { %v963_v59 = vsub.f32 %v951_v53, %v961_v58 }
 0xa10   :  { %v965_v60 = vmul.f32 %v963_v59, %v963_v59 }
 0xa12   :  { %v967_v61 = vsel %vm55_vm0, %v965_v60, 0.0 }
 0xa13   :  { %968 = vadd.xlane.f32.xlu1 %v967_v61 }
 0xa37   :  { %v960_v62 = vpop.xlane.xlu1 %959 }
 0xa38   :  { %v962_v7 = vmul.f32 %v960_v62, %v1385_v44 }
 0xa3a   :  { %v964_v63 = vsub.f32 %v952_v12, %v962_v7 }
 0xa3c   :  { %v966_v0 = vmul.f32 %v964_v63, %v964_v63 }
 0xa3e   :  { %v970_v1 = vsel %vm55_vm0, %v966_v0, 0.0 }
 0xa3f   :  { %971 = vadd.xlane.f32.xlu2 %v970_v1 }
 0xa86   :  { %v969_v22 = vpop.xlane.xlu1 %968 }
 0xa87   :  { %v973_v2 = vmul.f32 %v969_v22, %v1385_v44 }
 0xa89   :  { %v975_v3 = vadd.f32 1e-05, %v973_v2 }
 0xa8b   :  { %1130 = vrsqrt.f32 %v975_v3  ;;  %vm983_vm9 = vweird.f32 %v975_v3 }
 0xa91   :  { %v1131_v6 = vpop.eup %1130 }
 0xa92   :  { %v978_v8 = vmul.f32 %v1131_v6, %v975_v3  ;;  %vm984_vm8 = vweird.f32 %v1131_v6 }
 0xa93   :  { %vm985_vm10 = vmor %vm983_vm9, %vm984_vm8 }
 0xa94   :  { %v979_v9 = vmul.f32 %v1131_v6, %v978_v8 }
 0xa96   :  { %v980_v10 = vmul.f32 0.5, %v979_v9 }
 0xa98   :  { %v981_v13 = vsub.f32 1.5, %v980_v10 }
 0xa9a   :  { %v982_v14 = vmul.f32 %v1131_v6, %v981_v13 }
 0xa9c   :  { %v986_v16 = vsel %vm985_vm10, %v1131_v6, %v982_v14 }
 0xa9d   :  { %v997_v17 = vmul.f32 %v986_v16, %v963_v59 }
 0xa9f   :  { %v1002_v19 = vmul.f32 %v1082_v15, %v997_v17 }
 0xaa1   :  { %v1007_v20 = vadd.f32 %v1083_v18, %v1002_v19 }
 0xaa3   :  { %1009 = vst.msk [vmem:[#allocation5] sm:$0xff] %vm55_vm0, %v1007_v20 }
 0xab2   :  { %v972_v21 = vpop.xlane.xlu2 %971 }
 0xab3   :  { %v974_v23 = vmul.f32 %v972_v21, %v1385_v44 }
 0xab5   :  { %v976_v24 = vadd.f32 1e-05, %v974_v23 }
 0xab7   :  { %1132 = vrsqrt.f32 %v976_v24  ;;  %vm993_vm12 = vweird.f32 %v976_v24 }
 0xabd   :  { %v1133_v25 = vpop.eup %1132 }
 0xabe   :  { %v988_v26 = vmul.f32 %v1133_v25, %v976_v24  ;;  %vm994_vm11 = vweird.f32 %v1133_v25 }
 0xabf   :  { %vm995_vm13 = vmor %vm993_vm12, %vm994_vm11 }
 0xac0   :  { %v989_v27 = vmul.f32 %v1133_v25, %v988_v26 }
 0xac2   :  { %v990_v28 = vmul.f32 0.5, %v989_v27 }
 0xac4   :  { %v991_v30 = vsub.f32 1.5, %v990_v28 }
 0xac6   :  { %v992_v31 = vmul.f32 %v1133_v25, %v991_v30 }
 0xac8   :  { %v996_v29 = vsel %vm995_vm13, %v1133_v25, %v992_v31 }
 0xac9   :  { %v998_v32 = vmul.f32 %v996_v29, %v964_v63 }
 0xacb   :  { %v1003_v44 = vmul.f32 %v1082_v15, %v998_v32 }
 0xacd   :  { %v1008_v33 = vadd.f32 %v1083_v18, %v1003_v44 }
 0xacf   :  { %1010 = vst.msk [vmem:[#allocation5 + $0x8] sm:$0xff] %vm55_vm0, %v1008_v33 }
 0xad0   :  { %1023 = dma.vmem_to_hbm [thread:$0]  %s1016_s12, 256, %s1018_s23, [#allocation6], %s1176_s24, %s1176_s24, %s1172_s14  }
 0xad1   :  { %1158 = dma.done.wait [#allocation6], 256  }
 0xad2   :  { %1159 = vsyncadd [#allocation6], 4294967040 }
 0xad3   :  { %1028 = vsyncpa [#allocation6], 1 }

</bundles_post_ra>
